<compile_context>
chip_gen: v7x
topology: tpu7x:2x2x1
jax: 0.10.0
libtpu: 0.0.40
codegen_flags: <defaults>
</compile_context>

<pallas_src>
import math

import jax
import jax.numpy as jnp
from jax.experimental import pallas as pl
from jax.experimental.pallas import tpu as pltpu

# ----- small synthetic BERT config (stand-in for bert-base-uncased) -----------
B, S, H = 2, 8, 32          # batch, seq, hidden
NH, HD = 2, 16              # heads, head_dim (NH * HD == H)
I = 64                      # FFN intermediate size
L = 2                       # number of encoder layers
VOCAB = 50
MAX_POS = 16
LN_EPS = 1e-12              # BERT LayerNorm eps


# ------------------------------ kernel helpers --------------------------------
def _layer_norm(x, g, b):
    mu = jnp.mean(x, axis=-1, keepdims=True)
    var = jnp.mean((x - mu) ** 2, axis=-1, keepdims=True)
    return (x - mu) * jax.lax.rsqrt(var + LN_EPS) * g + b


def _gelu(x):
    c = math.sqrt(2.0 / math.pi)
    return 0.5 * x * (1.0 + jnp.tanh(c * (x + 0.044715 * x * x * x)))


# ------------------------------ fused Pallas kernel ----------------------------
def fused_kernel(x_emb_ref, emb_g_ref, emb_b_ref,
                 wqkv_ref, bqkv_ref, wo_ref, bo_ref, g1_ref, b1_ref,
                 wi_ref, bi_ref, wf_ref, bf_ref, g2_ref, b2_ref,
                 o_ref):
    """grid = (B,).  One invocation runs the embedding LayerNorm plus all L
    encoder layers for one batch item and writes its (L+1, H) CLS slab once."""
    scale = 1.0 / math.sqrt(HD)

    # Embedding LayerNorm (stage 0 hidden state).
    x = _layer_norm(x_emb_ref[0], emb_g_ref[...], emb_b_ref[...])      # (S, H)
    cls_rows = [x[0:1, :]]

    # Encoder layers: static Python loop, weights statically indexed from the
    # VMEM-resident stacked tensors.
    for l in range(L):
        # Fused QKV projection: one (S,H)@(H,3H) matmul + one fused bias add.
        qkv = jnp.dot(x, wqkv_ref[l],
                      preferred_element_type=jnp.float32) + bqkv_ref[l]  # (S, 3H)
        wo_l = wo_ref[l]                                                 # (H, H)

        attn_acc = jnp.zeros((S, H), jnp.float32)
        for h in range(NH):                            # heads statically unrolled
            q = qkv[:, h * HD:(h + 1) * HD]
            k = qkv[:, H + h * HD:H + (h + 1) * HD]
            v = qkv[:, 2 * H + h * HD:2 * H + (h + 1) * HD]
            s = jax.lax.dot_general(q, k, (((1,), (1,)), ((), ())),
                                    preferred_element_type=jnp.float32) * scale
            m = jnp.max(s, axis=-1, keepdims=True)
            p = jnp.exp(s - m)
            p = p / jnp.sum(p, axis=-1, keepdims=True)
            ctx = jnp.dot(p, v, preferred_element_type=jnp.float32)     # (S, HD)
            # Accumulate the per-head output projection (no ctx concat).
            attn_acc = attn_acc + jnp.dot(ctx, wo_l[h * HD:(h + 1) * HD, :],
                                          preferred_element_type=jnp.float32)

        x1 = _layer_norm(x + attn_acc + bo_ref[l], g1_ref[l], b1_ref[l])

        hdn = _gelu(jnp.dot(x1, wi_ref[l],
                            preferred_element_type=jnp.float32) + bi_ref[l])
        ffn = jnp.dot(hdn, wf_ref[l],
                      preferred_element_type=jnp.float32) + bf_ref[l]
        x = _layer_norm(x1 + ffn, g2_ref[l], b2_ref[l])
        cls_rows.append(x[0:1, :])

    # Single full-block store of all (L+1) CLS rows for this batch item.
    o_ref[0] = jnp.concatenate(cls_rows, axis=0)                        # (L+1, H)


# ------------------------------ pallas_call wrapper -----------------------------
def style_extractor_pallas(emb, emb_g, emb_b, packed):
    weights = (packed["wqkv"], packed["bqkv"], packed["wo"], packed["bo"],
               packed["g1"], packed["b1"], packed["wi"], packed["bi"],
               packed["wf"], packed["bf"], packed["g2"], packed["b2"])

    def full_spec(arr):
        # Whole array resident in VMEM; same block every grid step (no re-DMA).
        nd = arr.ndim
        return pl.BlockSpec(arr.shape, lambda b, _n=nd: (0,) * _n)

    in_specs = ([pl.BlockSpec((1, S, H), lambda b: (b, 0, 0)),   # embeddings
                 full_spec(emb_g),                               # emb LN gamma
                 full_spec(emb_b)]                               # emb LN beta
                + [full_spec(w) for w in weights])

    return pl.pallas_call(
        fused_kernel,
        out_shape=jax.ShapeDtypeStruct((B, L + 1, H), jnp.float32),
        grid_spec=pltpu.PrefetchScalarGridSpec(
            num_scalar_prefetch=0,
            grid=(B,),
            in_specs=in_specs,
            out_specs=pl.BlockSpec((1, L + 1, H), lambda b: (b, 0, 0))),
        compiler_params=pltpu.CompilerParams(
            dimension_semantics=("parallel",)),
    )(emb, emb_g, emb_b, *weights)


# ------------------------------ parameters -------------------------------------
def init_params(key):
    keys = iter(jax.random.split(key, 3 + 6 * L))

    def normal(shape):
        return 0.02 * jax.random.normal(next(keys), shape, jnp.float32)

    params = {
        "word_emb": normal((VOCAB, H)),
        "pos_emb": normal((MAX_POS, H)),
        "type_emb": normal((2, H)),
        "emb_g": jnp.ones((1, H), jnp.float32),
        "emb_b": jnp.zeros((1, H), jnp.float32),
        "layers": [],
    }
    for _ in range(L):
        params["layers"].append({
            "wq": normal((NH, H, HD)), "bq": jnp.zeros((NH, 1, HD), jnp.float32),
            "wk": normal((NH, H, HD)), "bk": jnp.zeros((NH, 1, HD), jnp.float32),
            "wv": normal((NH, H, HD)), "bv": jnp.zeros((NH, 1, HD), jnp.float32),
            "wo": normal((NH, HD, H)), "bo": jnp.zeros((1, H), jnp.float32),
            "g1": jnp.ones((1, H), jnp.float32), "b1": jnp.zeros((1, H), jnp.float32),
            "wi": normal((H, I)), "bi": jnp.zeros((1, I), jnp.float32),
            "wf": normal((I, H)), "bf": jnp.zeros((1, H), jnp.float32),
            "g2": jnp.ones((1, H), jnp.float32), "b2": jnp.zeros((1, H), jnp.float32),
        })
    return params


def pack_layer_params(layers):
    """Stack per-layer weights on a leading L axis; fuse QKV and per-head wo."""
    def fuse_w(p, name):   # (NH, H, HD) -> (H, NH*HD), head-major along lanes
        return jnp.transpose(p[name], (1, 0, 2)).reshape(H, NH * HD)

    def fuse_b(p, name):   # (NH, 1, HD) -> (1, NH*HD)
        return jnp.transpose(p[name], (1, 0, 2)).reshape(1, NH * HD)

    return {
        "wqkv": jnp.stack([jnp.concatenate(
            [fuse_w(p, "wq"), fuse_w(p, "wk"), fuse_w(p, "wv")], axis=-1)
            for p in layers]),                                        # (L, H, 3H)
        "bqkv": jnp.stack([jnp.concatenate(
            [fuse_b(p, "bq"), fuse_b(p, "bk"), fuse_b(p, "bv")], axis=-1)
            for p in layers]),                                        # (L, 1, 3H)
        "wo": jnp.stack([p["wo"].reshape(NH * HD, H) for p in layers]),  # (L, H, H)
        "bo": jnp.stack([p["bo"] for p in layers]),
        "g1": jnp.stack([p["g1"] for p in layers]),
        "b1": jnp.stack([p["b1"] for p in layers]),
        "wi": jnp.stack([p["wi"] for p in layers]),
        "bi": jnp.stack([p["bi"] for p in layers]),
        "wf": jnp.stack([p["wf"] for p in layers]),
        "bf": jnp.stack([p["bf"] for p in layers]),
        "g2": jnp.stack([p["g2"] for p in layers]),
        "b2": jnp.stack([p["b2"] for p in layers]),
    }


# ------------------------------ forward passes ----------------------------------
def style_extractor_forward(input_ids, params, packed):
    # TODO(synk): embedding gather (table lookup) stays in plain JAX glue;
    #             everything else is a single pallas_call.
    emb = (params["word_emb"][input_ids]
           + params["pos_emb"][jnp.arange(S)][None, :, :]
           + params["type_emb"][0][None, None, :])
    return style_extractor_pallas(emb, params["emb_g"], params["emb_b"], packed)


def reference_forward(input_ids, params):
    """Pure-JAX reference with identical math, for correctness checking."""
    emb = (params["word_emb"][input_ids]
           + params["pos_emb"][jnp.arange(S)][None, :, :]
           + params["type_emb"][0][None, None, :])
    hidden = _layer_norm(emb, params["emb_g"], params["emb_b"])
    all_hidden = [hidden]
    scale = 1.0 / math.sqrt(HD)
    for p in params["layers"]:
        x = hidden
        ctx_acc = jnp.zeros_like(x)
        for h in range(NH):
            q = jnp.einsum("bsh,hd->bsd", x, p["wq"][h]) + p["bq"][h]
            k = jnp.einsum("bsh,hd->bsd", x, p["wk"][h]) + p["bk"][h]
            v = jnp.einsum("bsh,hd->bsd", x, p["wv"][h]) + p["bv"][h]
            s = jnp.einsum("bqd,bkd->bqk", q, k) * scale
            attn = jax.nn.softmax(s, axis=-1)
            ctx = jnp.einsum("bqk,bkd->bqd", attn, v)
            ctx_acc = ctx_acc + jnp.einsum("bsd,dh->bsh", ctx, p["wo"][h])
        x1 = _layer_norm(x + ctx_acc + p["bo"], p["g1"], p["b1"])
        hdn = _gelu(jnp.einsum("bsh,hi->bsi", x1, p["wi"]) + p["bi"])
        ffn = jnp.einsum("bsi,ih->bsh", hdn, p["wf"]) + p["bf"]
        hidden = _layer_norm(x1 + ffn, p["g2"], p["b2"])
        all_hidden.append(hidden)
    hs = jnp.stack(all_hidden, axis=1)
    return hs[:, :, 0, :]


# ------------------------------ main ---------------------------------------------
if __name__ == "__main__":
    key = jax.random.PRNGKey(0)
    pkey, ikey = jax.random.split(key)
    params = init_params(pkey)
    packed = pack_layer_params(params["layers"])
    input_ids = jax.random.randint(ikey, (B, S), 0, VOCAB, dtype=jnp.int32)

    out = style_extractor_forward(input_ids, params, packed)
    out = jax.block_until_ready(out)

    ref = reference_forward(input_ids, params)
    assert out.shape == (B, L + 1, H), out.shape
    assert jnp.allclose(out, ref, atol=2e-3, rtol=2e-3), float(jnp.max(jnp.abs(out - ref)))

    print("KERNEL_OK")
</pallas_src>

<mosaic_0001>
module attributes {stable_mosaic.version = 11 : i64} {
  func.func @fused_kernel(%arg0: i32, %arg1: memref<1x8x32xf32, #tpu.memory_space<vmem>>, %arg2: memref<1x32xf32, #tpu.memory_space<vmem>>, %arg3: memref<1x32xf32, #tpu.memory_space<vmem>>, %arg4: memref<2x32x96xf32, #tpu.memory_space<vmem>>, %arg5: memref<2x1x96xf32, #tpu.memory_space<vmem>>, %arg6: memref<2x32x32xf32, #tpu.memory_space<vmem>>, %arg7: memref<2x1x32xf32, #tpu.memory_space<vmem>>, %arg8: memref<2x1x32xf32, #tpu.memory_space<vmem>>, %arg9: memref<2x1x32xf32, #tpu.memory_space<vmem>>, %arg10: memref<2x32x64xf32, #tpu.memory_space<vmem>>, %arg11: memref<2x1x64xf32, #tpu.memory_space<vmem>>, %arg12: memref<2x64x32xf32, #tpu.memory_space<vmem>>, %arg13: memref<2x1x32xf32, #tpu.memory_space<vmem>>, %arg14: memref<2x1x32xf32, #tpu.memory_space<vmem>>, %arg15: memref<2x1x32xf32, #tpu.memory_space<vmem>>, %arg16: memref<1x3x32xf32, #tpu.memory_space<vmem>>) attributes {dimension_semantics = [#tpu.dimension_semantics<parallel>], iteration_bounds = array<i64: 2>, scalar_prefetch = 0 : i64, scratch_operands = 0 : i64, tpu.core_type = #tpu.core_type<tc>, window_params = [{transform_indices = @transform_0, window_bounds = array<i64: 1, 8, 32>}, {pipeline_mode = #tpu.pipeline_mode<synchronous>, transform_indices = @transform_1, window_bounds = array<i64: 1, 32>}, {pipeline_mode = #tpu.pipeline_mode<synchronous>, transform_indices = @transform_2, window_bounds = array<i64: 1, 32>}, {pipeline_mode = #tpu.pipeline_mode<synchronous>, transform_indices = @transform_3, window_bounds = array<i64: 2, 32, 96>}, {pipeline_mode = #tpu.pipeline_mode<synchronous>, transform_indices = @transform_4, window_bounds = array<i64: 2, 1, 96>}, {pipeline_mode = #tpu.pipeline_mode<synchronous>, transform_indices = @transform_5, window_bounds = array<i64: 2, 32, 32>}, {pipeline_mode = #tpu.pipeline_mode<synchronous>, transform_indices = @transform_6, window_bounds = array<i64: 2, 1, 32>}, {pipeline_mode = #tpu.pipeline_mode<synchronous>, transform_indices = @transform_7, window_bounds = array<i64: 2, 1, 32>}, {pipeline_mode = #tpu.pipeline_mode<synchronous>, transform_indices = @transform_8, window_bounds = array<i64: 2, 1, 32>}, {pipeline_mode = #tpu.pipeline_mode<synchronous>, transform_indices = @transform_9, window_bounds = array<i64: 2, 32, 64>}, {pipeline_mode = #tpu.pipeline_mode<synchronous>, transform_indices = @transform_10, window_bounds = array<i64: 2, 1, 64>}, {pipeline_mode = #tpu.pipeline_mode<synchronous>, transform_indices = @transform_11, window_bounds = array<i64: 2, 64, 32>}, {pipeline_mode = #tpu.pipeline_mode<synchronous>, transform_indices = @transform_12, window_bounds = array<i64: 2, 1, 32>}, {pipeline_mode = #tpu.pipeline_mode<synchronous>, transform_indices = @transform_13, window_bounds = array<i64: 2, 1, 32>}, {pipeline_mode = #tpu.pipeline_mode<synchronous>, transform_indices = @transform_14, window_bounds = array<i64: 2, 1, 32>}, {transform_indices = @transform_15, window_bounds = array<i64: 1, 3, 32>}]} {
    %c0 = arith.constant 0 : index
    %c0_0 = arith.constant 0 : index
    %c0_1 = arith.constant 0 : index
    %0 = vector.load %arg1[%c0, %c0_0, %c0_1] : memref<1x8x32xf32, #tpu.memory_space<vmem>>, vector<1x8x32xf32>
    %1 = vector.shape_cast %0 : vector<1x8x32xf32> to vector<8x32xf32>
    %c0_2 = arith.constant 0 : index
    %c0_3 = arith.constant 0 : index
    %2 = vector.load %arg2[%c0_2, %c0_3] : memref<1x32xf32, #tpu.memory_space<vmem>>, vector<1x32xf32>
    %c0_4 = arith.constant 0 : index
    %c0_5 = arith.constant 0 : index
    %3 = vector.load %arg3[%c0_4, %c0_5] : memref<1x32xf32, #tpu.memory_space<vmem>>, vector<1x32xf32>
    %cst = arith.constant dense<0.000000e+00> : vector<8xf32>
    %4 = vector.multi_reduction <add>, %1, %cst [1] : vector<8x32xf32> to vector<8xf32>
    %5 = vector.shape_cast %4 : vector<8xf32> to vector<8x1xf32>
    %cst_6 = arith.constant 3.200000e+01 : f32
    %6 = vector.broadcast %cst_6 : f32 to vector<8x1xf32>
    %7 = arith.divf %5, %6 : vector<8x1xf32>
    %8 = vector.broadcast %7 : vector<8x1xf32> to vector<8x32xf32>
    %9 = arith.subf %1, %8 : vector<8x32xf32>
    %10 = arith.mulf %9, %9 : vector<8x32xf32>
    %cst_7 = arith.constant dense<0.000000e+00> : vector<8xf32>
    %11 = vector.multi_reduction <add>, %10, %cst_7 [1] : vector<8x32xf32> to vector<8xf32>
    %12 = vector.shape_cast %11 : vector<8xf32> to vector<8x1xf32>
    %cst_8 = arith.constant 3.200000e+01 : f32
    %13 = vector.broadcast %cst_8 : f32 to vector<8x1xf32>
    %14 = arith.divf %12, %13 : vector<8x1xf32>
    %15 = vector.broadcast %7 : vector<8x1xf32> to vector<8x32xf32>
    %16 = arith.subf %1, %15 : vector<8x32xf32>
    %cst_9 = arith.constant 9.99999996E-13 : f32
    %17 = vector.broadcast %cst_9 : f32 to vector<8x1xf32>
    %18 = arith.addf %14, %17 : vector<8x1xf32>
    %19 = math.rsqrt %18 : vector<8x1xf32>
    %20 = vector.broadcast %19 : vector<8x1xf32> to vector<8x32xf32>
    %21 = arith.mulf %16, %20 : vector<8x32xf32>
    %22 = vector.broadcast %2 : vector<1x32xf32> to vector<8x32xf32>
    %23 = arith.mulf %21, %22 : vector<8x32xf32>
    %24 = vector.broadcast %3 : vector<1x32xf32> to vector<8x32xf32>
    %25 = arith.addf %23, %24 : vector<8x32xf32>
    %26 = vector.extract_strided_slice %25 {offsets = [0, 0], sizes = [1, 32], strides = [1, 1]} : vector<8x32xf32> to vector<1x32xf32>
    %c0_10 = arith.constant 0 : index
    %c0_11 = arith.constant 0 : index
    %c0_12 = arith.constant 0 : index
    %27 = vector.load %arg4[%c0_10, %c0_11, %c0_12] : memref<2x32x96xf32, #tpu.memory_space<vmem>>, vector<1x32x96xf32>
    %28 = vector.shape_cast %27 : vector<1x32x96xf32> to vector<32x96xf32>
    %cst_13 = arith.constant dense<0.000000e+00> : vector<8x96xf32>
    %29 = tpu.matmul %25, %28, %cst_13 {dimension_numbers = #tpu.dot_dimension_numbers<[1], [0], [0], [1], [0, 0, 1, 1], [], []>} : vector<8x32xf32>, vector<32x96xf32>, vector<8x96xf32> -> vector<8x96xf32>
    %c0_14 = arith.constant 0 : index
    %c0_15 = arith.constant 0 : index
    %c0_16 = arith.constant 0 : index
    %30 = vector.load %arg5[%c0_14, %c0_15, %c0_16] : memref<2x1x96xf32, #tpu.memory_space<vmem>>, vector<1x1x96xf32>
    %31 = vector.shape_cast %30 : vector<1x1x96xf32> to vector<1x96xf32>
    %32 = vector.broadcast %31 : vector<1x96xf32> to vector<8x96xf32>
    %33 = arith.addf %29, %32 : vector<8x96xf32>
    %c0_17 = arith.constant 0 : index
    %c0_18 = arith.constant 0 : index
    %c0_19 = arith.constant 0 : index
    %34 = vector.load %arg6[%c0_17, %c0_18, %c0_19] : memref<2x32x32xf32, #tpu.memory_space<vmem>>, vector<1x32x32xf32>
    %35 = vector.shape_cast %34 : vector<1x32x32xf32> to vector<32x32xf32>
    %cst_20 = arith.constant 0.000000e+00 : f32
    %36 = vector.broadcast %cst_20 : f32 to vector<8x32xf32>
    %37 = vector.extract_strided_slice %33 {offsets = [0, 0], sizes = [8, 16], strides = [1, 1]} : vector<8x96xf32> to vector<8x16xf32>
    %38 = vector.extract_strided_slice %33 {offsets = [0, 32], sizes = [8, 16], strides = [1, 1]} : vector<8x96xf32> to vector<8x16xf32>
    %39 = vector.extract_strided_slice %33 {offsets = [0, 64], sizes = [8, 16], strides = [1, 1]} : vector<8x96xf32> to vector<8x16xf32>
    %cst_21 = arith.constant dense<0.000000e+00> : vector<8x8xf32>
    %40 = tpu.matmul %37, %38, %cst_21 {dimension_numbers = #tpu.dot_dimension_numbers<[1], [1], [0], [0], [0, 0, 1, 0], [], []>} : vector<8x16xf32>, vector<8x16xf32>, vector<8x8xf32> -> vector<8x8xf32>
    %cst_22 = arith.constant 2.500000e-01 : f32
    %41 = vector.broadcast %cst_22 : f32 to vector<8x8xf32>
    %42 = arith.mulf %40, %41 : vector<8x8xf32>
    %cst_23 = arith.constant dense<0xFF800000> : vector<8xf32>
    %43 = vector.multi_reduction <maximumf>, %42, %cst_23 [1] : vector<8x8xf32> to vector<8xf32>
    %44 = vector.shape_cast %43 : vector<8xf32> to vector<8x1xf32>
    %45 = vector.broadcast %44 : vector<8x1xf32> to vector<8x8xf32>
    %46 = arith.subf %42, %45 : vector<8x8xf32>
    %47 = math.exp %46 : vector<8x8xf32>
    %cst_24 = arith.constant dense<0.000000e+00> : vector<8xf32>
    %48 = vector.multi_reduction <add>, %47, %cst_24 [1] : vector<8x8xf32> to vector<8xf32>
    %49 = vector.shape_cast %48 : vector<8xf32> to vector<8x1xf32>
    %50 = vector.broadcast %49 : vector<8x1xf32> to vector<8x8xf32>
    %51 = arith.divf %47, %50 : vector<8x8xf32>
    %cst_25 = arith.constant dense<0.000000e+00> : vector<8x16xf32>
    %52 = tpu.matmul %51, %39, %cst_25 {dimension_numbers = #tpu.dot_dimension_numbers<[1], [0], [0], [1], [0, 0, 1, 1], [], []>} : vector<8x8xf32>, vector<8x16xf32>, vector<8x16xf32> -> vector<8x16xf32>
    %53 = vector.extract_strided_slice %35 {offsets = [0, 0], sizes = [16, 32], strides = [1, 1]} : vector<32x32xf32> to vector<16x32xf32>
    %cst_26 = arith.constant dense<0.000000e+00> : vector<8x32xf32>
    %54 = tpu.matmul %52, %53, %cst_26 {dimension_numbers = #tpu.dot_dimension_numbers<[1], [0], [0], [1], [0, 0, 1, 1], [], []>} : vector<8x16xf32>, vector<16x32xf32>, vector<8x32xf32> -> vector<8x32xf32>
    %55 = arith.addf %36, %54 : vector<8x32xf32>
    %56 = vector.extract_strided_slice %33 {offsets = [0, 16], sizes = [8, 16], strides = [1, 1]} : vector<8x96xf32> to vector<8x16xf32>
    %57 = vector.extract_strided_slice %33 {offsets = [0, 48], sizes = [8, 16], strides = [1, 1]} : vector<8x96xf32> to vector<8x16xf32>
    %58 = vector.extract_strided_slice %33 {offsets = [0, 80], sizes = [8, 16], strides = [1, 1]} : vector<8x96xf32> to vector<8x16xf32>
    %cst_27 = arith.constant dense<0.000000e+00> : vector<8x8xf32>
    %59 = tpu.matmul %56, %57, %cst_27 {dimension_numbers = #tpu.dot_dimension_numbers<[1], [1], [0], [0], [0, 0, 1, 0], [], []>} : vector<8x16xf32>, vector<8x16xf32>, vector<8x8xf32> -> vector<8x8xf32>
    %cst_28 = arith.constant 2.500000e-01 : f32
    %60 = vector.broadcast %cst_28 : f32 to vector<8x8xf32>
    %61 = arith.mulf %59, %60 : vector<8x8xf32>
    %cst_29 = arith.constant dense<0xFF800000> : vector<8xf32>
    %62 = vector.multi_reduction <maximumf>, %61, %cst_29 [1] : vector<8x8xf32> to vector<8xf32>
    %63 = vector.shape_cast %62 : vector<8xf32> to vector<8x1xf32>
    %64 = vector.broadcast %63 : vector<8x1xf32> to vector<8x8xf32>
    %65 = arith.subf %61, %64 : vector<8x8xf32>
    %66 = math.exp %65 : vector<8x8xf32>
    %cst_30 = arith.constant dense<0.000000e+00> : vector<8xf32>
    %67 = vector.multi_reduction <add>, %66, %cst_30 [1] : vector<8x8xf32> to vector<8xf32>
    %68 = vector.shape_cast %67 : vector<8xf32> to vector<8x1xf32>
    %69 = vector.broadcast %68 : vector<8x1xf32> to vector<8x8xf32>
    %70 = arith.divf %66, %69 : vector<8x8xf32>
    %cst_31 = arith.constant dense<0.000000e+00> : vector<8x16xf32>
    %71 = tpu.matmul %70, %58, %cst_31 {dimension_numbers = #tpu.dot_dimension_numbers<[1], [0], [0], [1], [0, 0, 1, 1], [], []>} : vector<8x8xf32>, vector<8x16xf32>, vector<8x16xf32> -> vector<8x16xf32>
    %72 = vector.extract_strided_slice %35 {offsets = [16, 0], sizes = [16, 32], strides = [1, 1]} : vector<32x32xf32> to vector<16x32xf32>
    %cst_32 = arith.constant dense<0.000000e+00> : vector<8x32xf32>
    %73 = tpu.matmul %71, %72, %cst_32 {dimension_numbers = #tpu.dot_dimension_numbers<[1], [0], [0], [1], [0, 0, 1, 1], [], []>} : vector<8x16xf32>, vector<16x32xf32>, vector<8x32xf32> -> vector<8x32xf32>
    %74 = arith.addf %55, %73 : vector<8x32xf32>
    %75 = arith.addf %25, %74 : vector<8x32xf32>
    %c0_33 = arith.constant 0 : index
    %c0_34 = arith.constant 0 : index
    %c0_35 = arith.constant 0 : index
    %76 = vector.load %arg7[%c0_33, %c0_34, %c0_35] : memref<2x1x32xf32, #tpu.memory_space<vmem>>, vector<1x1x32xf32>
    %77 = vector.shape_cast %76 : vector<1x1x32xf32> to vector<1x32xf32>
    %78 = vector.broadcast %77 : vector<1x32xf32> to vector<8x32xf32>
    %79 = arith.addf %75, %78 : vector<8x32xf32>
    %c0_36 = arith.constant 0 : index
    %c0_37 = arith.constant 0 : index
    %c0_38 = arith.constant 0 : index
    %80 = vector.load %arg8[%c0_36, %c0_37, %c0_38] : memref<2x1x32xf32, #tpu.memory_space<vmem>>, vector<1x1x32xf32>
    %81 = vector.shape_cast %80 : vector<1x1x32xf32> to vector<1x32xf32>
    %c0_39 = arith.constant 0 : index
    %c0_40 = arith.constant 0 : index
    %c0_41 = arith.constant 0 : index
    %82 = vector.load %arg9[%c0_39, %c0_40, %c0_41] : memref<2x1x32xf32, #tpu.memory_space<vmem>>, vector<1x1x32xf32>
    %83 = vector.shape_cast %82 : vector<1x1x32xf32> to vector<1x32xf32>
    %cst_42 = arith.constant dense<0.000000e+00> : vector<8xf32>
    %84 = vector.multi_reduction <add>, %79, %cst_42 [1] : vector<8x32xf32> to vector<8xf32>
    %85 = vector.shape_cast %84 : vector<8xf32> to vector<8x1xf32>
    %cst_43 = arith.constant 3.200000e+01 : f32
    %86 = vector.broadcast %cst_43 : f32 to vector<8x1xf32>
    %87 = arith.divf %85, %86 : vector<8x1xf32>
    %88 = vector.broadcast %87 : vector<8x1xf32> to vector<8x32xf32>
    %89 = arith.subf %79, %88 : vector<8x32xf32>
    %90 = arith.mulf %89, %89 : vector<8x32xf32>
    %cst_44 = arith.constant dense<0.000000e+00> : vector<8xf32>
    %91 = vector.multi_reduction <add>, %90, %cst_44 [1] : vector<8x32xf32> to vector<8xf32>
    %92 = vector.shape_cast %91 : vector<8xf32> to vector<8x1xf32>
    %cst_45 = arith.constant 3.200000e+01 : f32
    %93 = vector.broadcast %cst_45 : f32 to vector<8x1xf32>
    %94 = arith.divf %92, %93 : vector<8x1xf32>
    %95 = vector.broadcast %87 : vector<8x1xf32> to vector<8x32xf32>
    %96 = arith.subf %79, %95 : vector<8x32xf32>
    %cst_46 = arith.constant 9.99999996E-13 : f32
    %97 = vector.broadcast %cst_46 : f32 to vector<8x1xf32>
    %98 = arith.addf %94, %97 : vector<8x1xf32>
    %99 = math.rsqrt %98 : vector<8x1xf32>
    %100 = vector.broadcast %99 : vector<8x1xf32> to vector<8x32xf32>
    %101 = arith.mulf %96, %100 : vector<8x32xf32>
    %102 = vector.broadcast %81 : vector<1x32xf32> to vector<8x32xf32>
    %103 = arith.mulf %101, %102 : vector<8x32xf32>
    %104 = vector.broadcast %83 : vector<1x32xf32> to vector<8x32xf32>
    %105 = arith.addf %103, %104 : vector<8x32xf32>
    %c0_47 = arith.constant 0 : index
    %c0_48 = arith.constant 0 : index
    %c0_49 = arith.constant 0 : index
    %106 = vector.load %arg10[%c0_47, %c0_48, %c0_49] : memref<2x32x64xf32, #tpu.memory_space<vmem>>, vector<1x32x64xf32>
    %107 = vector.shape_cast %106 : vector<1x32x64xf32> to vector<32x64xf32>
    %cst_50 = arith.constant dense<0.000000e+00> : vector<8x64xf32>
    %108 = tpu.matmul %105, %107, %cst_50 {dimension_numbers = #tpu.dot_dimension_numbers<[1], [0], [0], [1], [0, 0, 1, 1], [], []>} : vector<8x32xf32>, vector<32x64xf32>, vector<8x64xf32> -> vector<8x64xf32>
    %c0_51 = arith.constant 0 : index
    %c0_52 = arith.constant 0 : index
    %c0_53 = arith.constant 0 : index
    %109 = vector.load %arg11[%c0_51, %c0_52, %c0_53] : memref<2x1x64xf32, #tpu.memory_space<vmem>>, vector<1x1x64xf32>
    %110 = vector.shape_cast %109 : vector<1x1x64xf32> to vector<1x64xf32>
    %111 = vector.broadcast %110 : vector<1x64xf32> to vector<8x64xf32>
    %112 = arith.addf %108, %111 : vector<8x64xf32>
    %cst_54 = arith.constant 5.000000e-01 : f32
    %113 = vector.broadcast %cst_54 : f32 to vector<8x64xf32>
    %114 = arith.mulf %113, %112 : vector<8x64xf32>
    %cst_55 = arith.constant 4.471500e-02 : f32
    %115 = vector.broadcast %cst_55 : f32 to vector<8x64xf32>
    %116 = arith.mulf %115, %112 : vector<8x64xf32>
    %117 = arith.mulf %116, %112 : vector<8x64xf32>
    %118 = arith.mulf %117, %112 : vector<8x64xf32>
    %119 = arith.addf %112, %118 : vector<8x64xf32>
    %cst_56 = arith.constant 0.797884583 : f32
    %120 = vector.broadcast %cst_56 : f32 to vector<8x64xf32>
    %121 = arith.mulf %120, %119 : vector<8x64xf32>
    %122 = math.tanh %121 : vector<8x64xf32>
    %cst_57 = arith.constant 1.000000e+00 : f32
    %123 = vector.broadcast %cst_57 : f32 to vector<8x64xf32>
    %124 = arith.addf %123, %122 : vector<8x64xf32>
    %125 = arith.mulf %114, %124 : vector<8x64xf32>
    %c0_58 = arith.constant 0 : index
    %c0_59 = arith.constant 0 : index
    %c0_60 = arith.constant 0 : index
    %126 = vector.load %arg12[%c0_58, %c0_59, %c0_60] : memref<2x64x32xf32, #tpu.memory_space<vmem>>, vector<1x64x32xf32>
    %127 = vector.shape_cast %126 : vector<1x64x32xf32> to vector<64x32xf32>
    %cst_61 = arith.constant dense<0.000000e+00> : vector<8x32xf32>
    %128 = tpu.matmul %125, %127, %cst_61 {dimension_numbers = #tpu.dot_dimension_numbers<[1], [0], [0], [1], [0, 0, 1, 1], [], []>} : vector<8x64xf32>, vector<64x32xf32>, vector<8x32xf32> -> vector<8x32xf32>
    %c0_62 = arith.constant 0 : index
    %c0_63 = arith.constant 0 : index
    %c0_64 = arith.constant 0 : index
    %129 = vector.load %arg13[%c0_62, %c0_63, %c0_64] : memref<2x1x32xf32, #tpu.memory_space<vmem>>, vector<1x1x32xf32>
    %130 = vector.shape_cast %129 : vector<1x1x32xf32> to vector<1x32xf32>
    %131 = vector.broadcast %130 : vector<1x32xf32> to vector<8x32xf32>
    %132 = arith.addf %128, %131 : vector<8x32xf32>
    %133 = arith.addf %105, %132 : vector<8x32xf32>
    %c0_65 = arith.constant 0 : index
    %c0_66 = arith.constant 0 : index
    %c0_67 = arith.constant 0 : index
    %134 = vector.load %arg14[%c0_65, %c0_66, %c0_67] : memref<2x1x32xf32, #tpu.memory_space<vmem>>, vector<1x1x32xf32>
    %135 = vector.shape_cast %134 : vector<1x1x32xf32> to vector<1x32xf32>
    %c0_68 = arith.constant 0 : index
    %c0_69 = arith.constant 0 : index
    %c0_70 = arith.constant 0 : index
    %136 = vector.load %arg15[%c0_68, %c0_69, %c0_70] : memref<2x1x32xf32, #tpu.memory_space<vmem>>, vector<1x1x32xf32>
    %137 = vector.shape_cast %136 : vector<1x1x32xf32> to vector<1x32xf32>
    %cst_71 = arith.constant dense<0.000000e+00> : vector<8xf32>
    %138 = vector.multi_reduction <add>, %133, %cst_71 [1] : vector<8x32xf32> to vector<8xf32>
    %139 = vector.shape_cast %138 : vector<8xf32> to vector<8x1xf32>
    %cst_72 = arith.constant 3.200000e+01 : f32
    %140 = vector.broadcast %cst_72 : f32 to vector<8x1xf32>
    %141 = arith.divf %139, %140 : vector<8x1xf32>
    %142 = vector.broadcast %141 : vector<8x1xf32> to vector<8x32xf32>
    %143 = arith.subf %133, %142 : vector<8x32xf32>
    %144 = arith.mulf %143, %143 : vector<8x32xf32>
    %cst_73 = arith.constant dense<0.000000e+00> : vector<8xf32>
    %145 = vector.multi_reduction <add>, %144, %cst_73 [1] : vector<8x32xf32> to vector<8xf32>
    %146 = vector.shape_cast %145 : vector<8xf32> to vector<8x1xf32>
    %cst_74 = arith.constant 3.200000e+01 : f32
    %147 = vector.broadcast %cst_74 : f32 to vector<8x1xf32>
    %148 = arith.divf %146, %147 : vector<8x1xf32>
    %149 = vector.broadcast %141 : vector<8x1xf32> to vector<8x32xf32>
    %150 = arith.subf %133, %149 : vector<8x32xf32>
    %cst_75 = arith.constant 9.99999996E-13 : f32
    %151 = vector.broadcast %cst_75 : f32 to vector<8x1xf32>
    %152 = arith.addf %148, %151 : vector<8x1xf32>
    %153 = math.rsqrt %152 : vector<8x1xf32>
    %154 = vector.broadcast %153 : vector<8x1xf32> to vector<8x32xf32>
    %155 = arith.mulf %150, %154 : vector<8x32xf32>
    %156 = vector.broadcast %135 : vector<1x32xf32> to vector<8x32xf32>
    %157 = arith.mulf %155, %156 : vector<8x32xf32>
    %158 = vector.broadcast %137 : vector<1x32xf32> to vector<8x32xf32>
    %159 = arith.addf %157, %158 : vector<8x32xf32>
    %160 = vector.extract_strided_slice %159 {offsets = [0, 0], sizes = [1, 32], strides = [1, 1]} : vector<8x32xf32> to vector<1x32xf32>
    %c1 = arith.constant 1 : index
    %c0_76 = arith.constant 0 : index
    %c0_77 = arith.constant 0 : index
    %161 = vector.load %arg4[%c1, %c0_76, %c0_77] : memref<2x32x96xf32, #tpu.memory_space<vmem>>, vector<1x32x96xf32>
    %162 = vector.shape_cast %161 : vector<1x32x96xf32> to vector<32x96xf32>
    %cst_78 = arith.constant dense<0.000000e+00> : vector<8x96xf32>
    %163 = tpu.matmul %159, %162, %cst_78 {dimension_numbers = #tpu.dot_dimension_numbers<[1], [0], [0], [1], [0, 0, 1, 1], [], []>} : vector<8x32xf32>, vector<32x96xf32>, vector<8x96xf32> -> vector<8x96xf32>
    %c1_79 = arith.constant 1 : index
    %c0_80 = arith.constant 0 : index
    %c0_81 = arith.constant 0 : index
    %164 = vector.load %arg5[%c1_79, %c0_80, %c0_81] : memref<2x1x96xf32, #tpu.memory_space<vmem>>, vector<1x1x96xf32>
    %165 = vector.shape_cast %164 : vector<1x1x96xf32> to vector<1x96xf32>
    %166 = vector.broadcast %165 : vector<1x96xf32> to vector<8x96xf32>
    %167 = arith.addf %163, %166 : vector<8x96xf32>
    %c1_82 = arith.constant 1 : index
    %c0_83 = arith.constant 0 : index
    %c0_84 = arith.constant 0 : index
    %168 = vector.load %arg6[%c1_82, %c0_83, %c0_84] : memref<2x32x32xf32, #tpu.memory_space<vmem>>, vector<1x32x32xf32>
    %169 = vector.shape_cast %168 : vector<1x32x32xf32> to vector<32x32xf32>
    %cst_85 = arith.constant 0.000000e+00 : f32
    %170 = vector.broadcast %cst_85 : f32 to vector<8x32xf32>
    %171 = vector.extract_strided_slice %167 {offsets = [0, 0], sizes = [8, 16], strides = [1, 1]} : vector<8x96xf32> to vector<8x16xf32>
    %172 = vector.extract_strided_slice %167 {offsets = [0, 32], sizes = [8, 16], strides = [1, 1]} : vector<8x96xf32> to vector<8x16xf32>
    %173 = vector.extract_strided_slice %167 {offsets = [0, 64], sizes = [8, 16], strides = [1, 1]} : vector<8x96xf32> to vector<8x16xf32>
    %cst_86 = arith.constant dense<0.000000e+00> : vector<8x8xf32>
    %174 = tpu.matmul %171, %172, %cst_86 {dimension_numbers = #tpu.dot_dimension_numbers<[1], [1], [0], [0], [0, 0, 1, 0], [], []>} : vector<8x16xf32>, vector<8x16xf32>, vector<8x8xf32> -> vector<8x8xf32>
    %cst_87 = arith.constant 2.500000e-01 : f32
    %175 = vector.broadcast %cst_87 : f32 to vector<8x8xf32>
    %176 = arith.mulf %174, %175 : vector<8x8xf32>
    %cst_88 = arith.constant dense<0xFF800000> : vector<8xf32>
    %177 = vector.multi_reduction <maximumf>, %176, %cst_88 [1] : vector<8x8xf32> to vector<8xf32>
    %178 = vector.shape_cast %177 : vector<8xf32> to vector<8x1xf32>
    %179 = vector.broadcast %178 : vector<8x1xf32> to vector<8x8xf32>
    %180 = arith.subf %176, %179 : vector<8x8xf32>
    %181 = math.exp %180 : vector<8x8xf32>
    %cst_89 = arith.constant dense<0.000000e+00> : vector<8xf32>
    %182 = vector.multi_reduction <add>, %181, %cst_89 [1] : vector<8x8xf32> to vector<8xf32>
    %183 = vector.shape_cast %182 : vector<8xf32> to vector<8x1xf32>
    %184 = vector.broadcast %183 : vector<8x1xf32> to vector<8x8xf32>
    %185 = arith.divf %181, %184 : vector<8x8xf32>
    %cst_90 = arith.constant dense<0.000000e+00> : vector<8x16xf32>
    %186 = tpu.matmul %185, %173, %cst_90 {dimension_numbers = #tpu.dot_dimension_numbers<[1], [0], [0], [1], [0, 0, 1, 1], [], []>} : vector<8x8xf32>, vector<8x16xf32>, vector<8x16xf32> -> vector<8x16xf32>
    %187 = vector.extract_strided_slice %169 {offsets = [0, 0], sizes = [16, 32], strides = [1, 1]} : vector<32x32xf32> to vector<16x32xf32>
    %cst_91 = arith.constant dense<0.000000e+00> : vector<8x32xf32>
    %188 = tpu.matmul %186, %187, %cst_91 {dimension_numbers = #tpu.dot_dimension_numbers<[1], [0], [0], [1], [0, 0, 1, 1], [], []>} : vector<8x16xf32>, vector<16x32xf32>, vector<8x32xf32> -> vector<8x32xf32>
    %189 = arith.addf %170, %188 : vector<8x32xf32>
    %190 = vector.extract_strided_slice %167 {offsets = [0, 16], sizes = [8, 16], strides = [1, 1]} : vector<8x96xf32> to vector<8x16xf32>
    %191 = vector.extract_strided_slice %167 {offsets = [0, 48], sizes = [8, 16], strides = [1, 1]} : vector<8x96xf32> to vector<8x16xf32>
    %192 = vector.extract_strided_slice %167 {offsets = [0, 80], sizes = [8, 16], strides = [1, 1]} : vector<8x96xf32> to vector<8x16xf32>
    %cst_92 = arith.constant dense<0.000000e+00> : vector<8x8xf32>
    %193 = tpu.matmul %190, %191, %cst_92 {dimension_numbers = #tpu.dot_dimension_numbers<[1], [1], [0], [0], [0, 0, 1, 0], [], []>} : vector<8x16xf32>, vector<8x16xf32>, vector<8x8xf32> -> vector<8x8xf32>
    %cst_93 = arith.constant 2.500000e-01 : f32
    %194 = vector.broadcast %cst_93 : f32 to vector<8x8xf32>
    %195 = arith.mulf %193, %194 : vector<8x8xf32>
    %cst_94 = arith.constant dense<0xFF800000> : vector<8xf32>
    %196 = vector.multi_reduction <maximumf>, %195, %cst_94 [1] : vector<8x8xf32> to vector<8xf32>
    %197 = vector.shape_cast %196 : vector<8xf32> to vector<8x1xf32>
    %198 = vector.broadcast %197 : vector<8x1xf32> to vector<8x8xf32>
    %199 = arith.subf %195, %198 : vector<8x8xf32>
    %200 = math.exp %199 : vector<8x8xf32>
    %cst_95 = arith.constant dense<0.000000e+00> : vector<8xf32>
    %201 = vector.multi_reduction <add>, %200, %cst_95 [1] : vector<8x8xf32> to vector<8xf32>
    %202 = vector.shape_cast %201 : vector<8xf32> to vector<8x1xf32>
    %203 = vector.broadcast %202 : vector<8x1xf32> to vector<8x8xf32>
    %204 = arith.divf %200, %203 : vector<8x8xf32>
    %cst_96 = arith.constant dense<0.000000e+00> : vector<8x16xf32>
    %205 = tpu.matmul %204, %192, %cst_96 {dimension_numbers = #tpu.dot_dimension_numbers<[1], [0], [0], [1], [0, 0, 1, 1], [], []>} : vector<8x8xf32>, vector<8x16xf32>, vector<8x16xf32> -> vector<8x16xf32>
    %206 = vector.extract_strided_slice %169 {offsets = [16, 0], sizes = [16, 32], strides = [1, 1]} : vector<32x32xf32> to vector<16x32xf32>
    %cst_97 = arith.constant dense<0.000000e+00> : vector<8x32xf32>
    %207 = tpu.matmul %205, %206, %cst_97 {dimension_numbers = #tpu.dot_dimension_numbers<[1], [0], [0], [1], [0, 0, 1, 1], [], []>} : vector<8x16xf32>, vector<16x32xf32>, vector<8x32xf32> -> vector<8x32xf32>
    %208 = arith.addf %189, %207 : vector<8x32xf32>
    %209 = arith.addf %159, %208 : vector<8x32xf32>
    %c1_98 = arith.constant 1 : index
    %c0_99 = arith.constant 0 : index
    %c0_100 = arith.constant 0 : index
    %210 = vector.load %arg7[%c1_98, %c0_99, %c0_100] : memref<2x1x32xf32, #tpu.memory_space<vmem>>, vector<1x1x32xf32>
    %211 = vector.shape_cast %210 : vector<1x1x32xf32> to vector<1x32xf32>
    %212 = vector.broadcast %211 : vector<1x32xf32> to vector<8x32xf32>
    %213 = arith.addf %209, %212 : vector<8x32xf32>
    %c1_101 = arith.constant 1 : index
    %c0_102 = arith.constant 0 : index
    %c0_103 = arith.constant 0 : index
    %214 = vector.load %arg8[%c1_101, %c0_102, %c0_103] : memref<2x1x32xf32, #tpu.memory_space<vmem>>, vector<1x1x32xf32>
    %215 = vector.shape_cast %214 : vector<1x1x32xf32> to vector<1x32xf32>
    %c1_104 = arith.constant 1 : index
    %c0_105 = arith.constant 0 : index
    %c0_106 = arith.constant 0 : index
    %216 = vector.load %arg9[%c1_104, %c0_105, %c0_106] : memref<2x1x32xf32, #tpu.memory_space<vmem>>, vector<1x1x32xf32>
    %217 = vector.shape_cast %216 : vector<1x1x32xf32> to vector<1x32xf32>
    %cst_107 = arith.constant dense<0.000000e+00> : vector<8xf32>
    %218 = vector.multi_reduction <add>, %213, %cst_107 [1] : vector<8x32xf32> to vector<8xf32>
    %219 = vector.shape_cast %218 : vector<8xf32> to vector<8x1xf32>
    %cst_108 = arith.constant 3.200000e+01 : f32
    %220 = vector.broadcast %cst_108 : f32 to vector<8x1xf32>
    %221 = arith.divf %219, %220 : vector<8x1xf32>
    %222 = vector.broadcast %221 : vector<8x1xf32> to vector<8x32xf32>
    %223 = arith.subf %213, %222 : vector<8x32xf32>
    %224 = arith.mulf %223, %223 : vector<8x32xf32>
    %cst_109 = arith.constant dense<0.000000e+00> : vector<8xf32>
    %225 = vector.multi_reduction <add>, %224, %cst_109 [1] : vector<8x32xf32> to vector<8xf32>
    %226 = vector.shape_cast %225 : vector<8xf32> to vector<8x1xf32>
    %cst_110 = arith.constant 3.200000e+01 : f32
    %227 = vector.broadcast %cst_110 : f32 to vector<8x1xf32>
    %228 = arith.divf %226, %227 : vector<8x1xf32>
    %229 = vector.broadcast %221 : vector<8x1xf32> to vector<8x32xf32>
    %230 = arith.subf %213, %229 : vector<8x32xf32>
    %cst_111 = arith.constant 9.99999996E-13 : f32
    %231 = vector.broadcast %cst_111 : f32 to vector<8x1xf32>
    %232 = arith.addf %228, %231 : vector<8x1xf32>
    %233 = math.rsqrt %232 : vector<8x1xf32>
    %234 = vector.broadcast %233 : vector<8x1xf32> to vector<8x32xf32>
    %235 = arith.mulf %230, %234 : vector<8x32xf32>
    %236 = vector.broadcast %215 : vector<1x32xf32> to vector<8x32xf32>
    %237 = arith.mulf %235, %236 : vector<8x32xf32>
    %238 = vector.broadcast %217 : vector<1x32xf32> to vector<8x32xf32>
    %239 = arith.addf %237, %238 : vector<8x32xf32>
    %c1_112 = arith.constant 1 : index
    %c0_113 = arith.constant 0 : index
    %c0_114 = arith.constant 0 : index
    %240 = vector.load %arg10[%c1_112, %c0_113, %c0_114] : memref<2x32x64xf32, #tpu.memory_space<vmem>>, vector<1x32x64xf32>
    %241 = vector.shape_cast %240 : vector<1x32x64xf32> to vector<32x64xf32>
    %cst_115 = arith.constant dense<0.000000e+00> : vector<8x64xf32>
    %242 = tpu.matmul %239, %241, %cst_115 {dimension_numbers = #tpu.dot_dimension_numbers<[1], [0], [0], [1], [0, 0, 1, 1], [], []>} : vector<8x32xf32>, vector<32x64xf32>, vector<8x64xf32> -> vector<8x64xf32>
    %c1_116 = arith.constant 1 : index
    %c0_117 = arith.constant 0 : index
    %c0_118 = arith.constant 0 : index
    %243 = vector.load %arg11[%c1_116, %c0_117, %c0_118] : memref<2x1x64xf32, #tpu.memory_space<vmem>>, vector<1x1x64xf32>
    %244 = vector.shape_cast %243 : vector<1x1x64xf32> to vector<1x64xf32>
    %245 = vector.broadcast %244 : vector<1x64xf32> to vector<8x64xf32>
    %246 = arith.addf %242, %245 : vector<8x64xf32>
    %cst_119 = arith.constant 5.000000e-01 : f32
    %247 = vector.broadcast %cst_119 : f32 to vector<8x64xf32>
    %248 = arith.mulf %247, %246 : vector<8x64xf32>
    %cst_120 = arith.constant 4.471500e-02 : f32
    %249 = vector.broadcast %cst_120 : f32 to vector<8x64xf32>
    %250 = arith.mulf %249, %246 : vector<8x64xf32>
    %251 = arith.mulf %250, %246 : vector<8x64xf32>
    %252 = arith.mulf %251, %246 : vector<8x64xf32>
    %253 = arith.addf %246, %252 : vector<8x64xf32>
    %cst_121 = arith.constant 0.797884583 : f32
    %254 = vector.broadcast %cst_121 : f32 to vector<8x64xf32>
    %255 = arith.mulf %254, %253 : vector<8x64xf32>
    %256 = math.tanh %255 : vector<8x64xf32>
    %cst_122 = arith.constant 1.000000e+00 : f32
    %257 = vector.broadcast %cst_122 : f32 to vector<8x64xf32>
    %258 = arith.addf %257, %256 : vector<8x64xf32>
    %259 = arith.mulf %248, %258 : vector<8x64xf32>
    %c1_123 = arith.constant 1 : index
    %c0_124 = arith.constant 0 : index
    %c0_125 = arith.constant 0 : index
    %260 = vector.load %arg12[%c1_123, %c0_124, %c0_125] : memref<2x64x32xf32, #tpu.memory_space<vmem>>, vector<1x64x32xf32>
    %261 = vector.shape_cast %260 : vector<1x64x32xf32> to vector<64x32xf32>
    %cst_126 = arith.constant dense<0.000000e+00> : vector<8x32xf32>
    %262 = tpu.matmul %259, %261, %cst_126 {dimension_numbers = #tpu.dot_dimension_numbers<[1], [0], [0], [1], [0, 0, 1, 1], [], []>} : vector<8x64xf32>, vector<64x32xf32>, vector<8x32xf32> -> vector<8x32xf32>
    %c1_127 = arith.constant 1 : index
    %c0_128 = arith.constant 0 : index
    %c0_129 = arith.constant 0 : index
    %263 = vector.load %arg13[%c1_127, %c0_128, %c0_129] : memref<2x1x32xf32, #tpu.memory_space<vmem>>, vector<1x1x32xf32>
    %264 = vector.shape_cast %263 : vector<1x1x32xf32> to vector<1x32xf32>
    %265 = vector.broadcast %264 : vector<1x32xf32> to vector<8x32xf32>
    %266 = arith.addf %262, %265 : vector<8x32xf32>
    %267 = arith.addf %239, %266 : vector<8x32xf32>
    %c1_130 = arith.constant 1 : index
    %c0_131 = arith.constant 0 : index
    %c0_132 = arith.constant 0 : index
    %268 = vector.load %arg14[%c1_130, %c0_131, %c0_132] : memref<2x1x32xf32, #tpu.memory_space<vmem>>, vector<1x1x32xf32>
    %269 = vector.shape_cast %268 : vector<1x1x32xf32> to vector<1x32xf32>
    %c1_133 = arith.constant 1 : index
    %c0_134 = arith.constant 0 : index
    %c0_135 = arith.constant 0 : index
    %270 = vector.load %arg15[%c1_133, %c0_134, %c0_135] : memref<2x1x32xf32, #tpu.memory_space<vmem>>, vector<1x1x32xf32>
    %271 = vector.shape_cast %270 : vector<1x1x32xf32> to vector<1x32xf32>
    %cst_136 = arith.constant dense<0.000000e+00> : vector<8xf32>
    %272 = vector.multi_reduction <add>, %267, %cst_136 [1] : vector<8x32xf32> to vector<8xf32>
    %273 = vector.shape_cast %272 : vector<8xf32> to vector<8x1xf32>
    %cst_137 = arith.constant 3.200000e+01 : f32
    %274 = vector.broadcast %cst_137 : f32 to vector<8x1xf32>
    %275 = arith.divf %273, %274 : vector<8x1xf32>
    %276 = vector.broadcast %275 : vector<8x1xf32> to vector<8x32xf32>
    %277 = arith.subf %267, %276 : vector<8x32xf32>
    %278 = arith.mulf %277, %277 : vector<8x32xf32>
    %cst_138 = arith.constant dense<0.000000e+00> : vector<8xf32>
    %279 = vector.multi_reduction <add>, %278, %cst_138 [1] : vector<8x32xf32> to vector<8xf32>
    %280 = vector.shape_cast %279 : vector<8xf32> to vector<8x1xf32>
    %cst_139 = arith.constant 3.200000e+01 : f32
    %281 = vector.broadcast %cst_139 : f32 to vector<8x1xf32>
    %282 = arith.divf %280, %281 : vector<8x1xf32>
    %283 = vector.broadcast %275 : vector<8x1xf32> to vector<8x32xf32>
    %284 = arith.subf %267, %283 : vector<8x32xf32>
    %cst_140 = arith.constant 9.99999996E-13 : f32
    %285 = vector.broadcast %cst_140 : f32 to vector<8x1xf32>
    %286 = arith.addf %282, %285 : vector<8x1xf32>
    %287 = math.rsqrt %286 : vector<8x1xf32>
    %288 = vector.broadcast %287 : vector<8x1xf32> to vector<8x32xf32>
    %289 = arith.mulf %284, %288 : vector<8x32xf32>
    %290 = vector.broadcast %269 : vector<1x32xf32> to vector<8x32xf32>
    %291 = arith.mulf %289, %290 : vector<8x32xf32>
    %292 = vector.broadcast %271 : vector<1x32xf32> to vector<8x32xf32>
    %293 = arith.addf %291, %292 : vector<8x32xf32>
    %294 = vector.extract_strided_slice %293 {offsets = [0, 0], sizes = [1, 32], strides = [1, 1]} : vector<8x32xf32> to vector<1x32xf32>
    %295 = tpu.concatenate %26, %160, %294 in 0 : vector<1x32xf32>, vector<1x32xf32>, vector<1x32xf32> -> vector<3x32xf32>
    %c0_141 = arith.constant 0 : index
    %c0_142 = arith.constant 0 : index
    %c0_143 = arith.constant 0 : index
    %296 = vector.load %arg16[%c0_141, %c0_142, %c0_143] : memref<1x3x32xf32, #tpu.memory_space<vmem>>, vector<1x3x32xf32>
    %297 = vector.shape_cast %296 : vector<1x3x32xf32> to vector<3x32xf32>
    %298 = vector.shape_cast %295 : vector<3x32xf32> to vector<1x3x32xf32>
    tpu.vector_store %arg16[%c0_141, %c0_142, %c0_143], %298 {strides = array<i32>} : memref<1x3x32xf32, #tpu.memory_space<vmem>>, vector<1x3x32xf32>,
    return
  }
  func.func @transform_0(%arg0: i32) -> (i32, i32, i32) {
    %c0_i32 = arith.constant 0 : i32
    %c0_i32_0 = arith.constant 0 : i32
    %c0_i32_1 = arith.constant 0 : i32
    return %arg0, %c0_i32, %c0_i32_0 : i32, i32, i32
  }
  func.func @transform_1(%arg0: i32) -> (i32, i32) {
    %c0_i32 = arith.constant 0 : i32
    %c0_i32_0 = arith.constant 0 : i32
    %c0_i32_1 = arith.constant 0 : i32
    return %c0_i32, %c0_i32_0 : i32, i32
  }
  func.func @transform_2(%arg0: i32) -> (i32, i32) {
    %c0_i32 = arith.constant 0 : i32
    %c0_i32_0 = arith.constant 0 : i32
    %c0_i32_1 = arith.constant 0 : i32
    return %c0_i32, %c0_i32_0 : i32, i32
  }
  func.func @transform_3(%arg0: i32) -> (i32, i32, i32) {
    %c0_i32 = arith.constant 0 : i32
    %c0_i32_0 = arith.constant 0 : i32
    %c0_i32_1 = arith.constant 0 : i32
    %c0_i32_2 = arith.constant 0 : i32
    return %c0_i32, %c0_i32_0, %c0_i32_1 : i32, i32, i32
  }
  func.func @transform_4(%arg0: i32) -> (i32, i32, i32) {
    %c0_i32 = arith.constant 0 : i32
    %c0_i32_0 = arith.constant 0 : i32
    %c0_i32_1 = arith.constant 0 : i32
    %c0_i32_2 = arith.constant 0 : i32
    return %c0_i32, %c0_i32_0, %c0_i32_1 : i32, i32, i32
  }
  func.func @transform_5(%arg0: i32) -> (i32, i32, i32) {
    %c0_i32 = arith.constant 0 : i32
    %c0_i32_0 = arith.constant 0 : i32
    %c0_i32_1 = arith.constant 0 : i32
    %c0_i32_2 = arith.constant 0 : i32
    return %c0_i32, %c0_i32_0, %c0_i32_1 : i32, i32, i32
  }
  func.func @transform_6(%arg0: i32) -> (i32, i32, i32) {
    %c0_i32 = arith.constant 0 : i32
    %c0_i32_0 = arith.constant 0 : i32
    %c0_i32_1 = arith.constant 0 : i32
    %c0_i32_2 = arith.constant 0 : i32
    return %c0_i32, %c0_i32_0, %c0_i32_1 : i32, i32, i32
  }
  func.func @transform_7(%arg0: i32) -> (i32, i32, i32) {
    %c0_i32 = arith.constant 0 : i32
    %c0_i32_0 = arith.constant 0 : i32
    %c0_i32_1 = arith.constant 0 : i32
    %c0_i32_2 = arith.constant 0 : i32
    return %c0_i32, %c0_i32_0, %c0_i32_1 : i32, i32, i32
  }
  func.func @transform_8(%arg0: i32) -> (i32, i32, i32) {
    %c0_i32 = arith.constant 0 : i32
    %c0_i32_0 = arith.constant 0 : i32
    %c0_i32_1 = arith.constant 0 : i32
    %c0_i32_2 = arith.constant 0 : i32
    return %c0_i32, %c0_i32_0, %c0_i32_1 : i32, i32, i32
  }
  func.func @transform_9(%arg0: i32) -> (i32, i32, i32) {
    %c0_i32 = arith.constant 0 : i32
    %c0_i32_0 = arith.constant 0 : i32
    %c0_i32_1 = arith.constant 0 : i32
    %c0_i32_2 = arith.constant 0 : i32
    return %c0_i32, %c0_i32_0, %c0_i32_1 : i32, i32, i32
  }
  func.func @transform_10(%arg0: i32) -> (i32, i32, i32) {
    %c0_i32 = arith.constant 0 : i32
    %c0_i32_0 = arith.constant 0 : i32
    %c0_i32_1 = arith.constant 0 : i32
    %c0_i32_2 = arith.constant 0 : i32
    return %c0_i32, %c0_i32_0, %c0_i32_1 : i32, i32, i32
  }
  func.func @transform_11(%arg0: i32) -> (i32, i32, i32) {
    %c0_i32 = arith.constant 0 : i32
    %c0_i32_0 = arith.constant 0 : i32
    %c0_i32_1 = arith.constant 0 : i32
    %c0_i32_2 = arith.constant 0 : i32
    return %c0_i32, %c0_i32_0, %c0_i32_1 : i32, i32, i32
  }
  func.func @transform_12(%arg0: i32) -> (i32, i32, i32) {
    %c0_i32 = arith.constant 0 : i32
    %c0_i32_0 = arith.constant 0 : i32
    %c0_i32_1 = arith.constant 0 : i32
    %c0_i32_2 = arith.constant 0 : i32
    return %c0_i32, %c0_i32_0, %c0_i32_1 : i32, i32, i32
  }
  func.func @transform_13(%arg0: i32) -> (i32, i32, i32) {
    %c0_i32 = arith.constant 0 : i32
    %c0_i32_0 = arith.constant 0 : i32
    %c0_i32_1 = arith.constant 0 : i32
    %c0_i32_2 = arith.constant 0 : i32
    return %c0_i32, %c0_i32_0, %c0_i32_1 : i32, i32, i32
  }
  func.func @transform_14(%arg0: i32) -> (i32, i32, i32) {
    %c0_i32 = arith.constant 0 : i32
    %c0_i32_0 = arith.constant 0 : i32
    %c0_i32_1 = arith.constant 0 : i32
    %c0_i32_2 = arith.constant 0 : i32
    return %c0_i32, %c0_i32_0, %c0_i32_1 : i32, i32, i32
  }
  func.func @transform_15(%arg0: i32) -> (i32, i32, i32) {
    %c0_i32 = arith.constant 0 : i32
    %c0_i32_0 = arith.constant 0 : i32
    %c0_i32_1 = arith.constant 0 : i32
    return %arg0, %c0_i32, %c0_i32_0 : i32, i32, i32
  }
}

</mosaic_0001>

<bundles_post_ra>
// kernel: tpu_custom_call.1
= control target key start
LH: loop header
LB: loop body
LE: loop exit
PB: predicated region body
PF: predicated region fallthrough
CT: control target
= control target key end

     0   :  { %s3359_s0 = inlined_call_operand.hbm [shape: f32[2,8,32], index: 0, kind: input, shape index: {}]   ;;  %s3360_s1 = inlined_call_operand.vmem [shape: f32[1,32], index: 1, kind: input, shape index: {}]   ;;  %s3361_s2 = inlined_call_operand.hbm [shape: f32[1,32], index: 2, kind: input, shape index: {}]   ;;  %s3362_s3 = inlined_call_operand.vmem [shape: f32[2,32,96], index: 3, kind: input, shape index: {}]   ;;  %s3363_s4 = inlined_call_operand.vmem [shape: f32[2,1,96], index: 4, kind: input, shape index: {}]   ;;  %s3364_s5 = inlined_call_operand.vmem [shape: f32[2,32,32], index: 5, kind: input, shape index: {}]   ;;  %s3365_s6 = inlined_call_operand.vmem [shape: f32[2,1,32], index: 6, kind: input, shape index: {}]   ;;  %s3366_s7 = inlined_call_operand.vmem [shape: f32[2,1,32], index: 7, kind: input, shape index: {}]   ;;  %s3367_s8 = inlined_call_operand.vmem [shape: f32[2,1,32], index: 8, kind: input, shape index: {}]   ;;  %s3368_s9 = inlined_call_operand.vmem [shape: f32[2,32,64], index: 9, kind: input, shape index: {}]   ;;  %s3369_s10 = inlined_call_operand.vmem [shape: f32[2,1,64], index: 10, kind: input, shape index: {}]   ;;  %s3370_s11 = inlined_call_operand.vmem [shape: f32[2,64,32], index: 11, kind: input, shape index: {}]   ;;  %s3371_s12 = inlined_call_operand.vmem [shape: f32[2,1,32], index: 12, kind: input, shape index: {}]   ;;  %s3372_s13 = inlined_call_operand.vmem [shape: f32[2,1,32], index: 13, kind: input, shape index: {}]   ;;  %s3373_s14 = inlined_call_operand.vmem [shape: f32[2,1,32], index: 14, kind: input, shape index: {}]   ;;  %s3374_s15 = inlined_call_operand.vmem [shape: f32[2,3,32], index: 15, kind: output, shape index: {}]  }
   0x1   :  { %3382 = sst [smem:[#allocation9_spill]] %s3361_s2 }
   0x2   :  { %3383 = sst [smem:[#allocation10_spill]] %s3372_s13 }
   0x3   :  { %3384 = sst [smem:[#allocation11_spill]] %s3373_s14 }
   0x4   :  { %3385 = sst [smem:[#allocation12_spill]] %s3374_s15 }
   0x5   :  { %20 = vsyncpa [#allocation3], 0 }
   0x6   :  { %22 = vsyncpa [#allocation3 + $0x1], 0 }
   0x7   :  { %23 = vsyncpa [#allocation5], 0  ;;  %s2916_s18 = smov 0   ;;  %s2918_s19 = smov 0  }
   0x8   :  { %s2920_s20 = smov 0   ;;  %s2922_s21 = smov 0  }
   0x9 LB: > { %s2935_s22 = sadd.s32 4294967295, %s2824_s21   ;;  %p49_p0 = scmp.ne.s32.totalorder %s2816_s19, %s2812_s18  ;;  %s2824_s21 = sphi %s2922_s21, %s3403_s21   ;;  %s2820_s20 = sphi %s2920_s20, %s3406_s20   ;;  %s2816_s19 = sphi %s2918_s19, %s3405_s19   ;;  %s2812_s18 = sphi %s2916_s18, %s3404_s18  }
   0xa   : > { %p3379_p1 = scmp.eq.s32.totalorder %s2935_s22, 0  ;;  %p2285_p2 = scmp.ge.s32.totalorder %s2824_s21, 1 }
   0xb   : > { %p380_p3 = scmp.lt.s32.totalorder %s2824_s21, 3  ;;  %s2826_s25 = smov [#allocation4]  }
   0xc   : > { %p2943_p4 = por %p3379_p1, %p49_p0  ;;  %s396_s26 = sshll.u32 %s2826_s25, 4  ;;  %s397_s26 = int_to_ptr.vmem [resolvable:$true] %s396_s26 }
   0xd   : > { %p2947_p5 = pnand %p2285_p2, %p380_p3  ;;  %s2954_s27 = sadd.s32 1, %s2824_s21  }
   0xe   : > { %s3386_s23 = scalar_select %p2943_p4, 1, 0 }
   0xf   : > { %s3387_s24 = scalar_select %p2947_p5, 1, 0 }
  0x10   : > { %p2646_p6 = pneg %p2947_p5  ;;  %3388 = sst [smem:[#allocation8_spill]] %s2954_s27 }
  0x11   : > { %s33_s29 = ssub.s32 %s2824_s21, %s2954_s27  ;;  %s36_s16 = sadd.s32 1, %s2820_s20 }
  0x12   : > { %p2958_p7 = pnand %p2646_p6, %p3379_p1  ;;  %p2964_p8 = scmp.eq.s32.totalorder %s33_s29, 0 }
  0x13   : > { %s3391_s2 = sld [smem:[#allocation9_spill]] }
  0x14   : > { %s3390_s30 = scalar_select %p2964_p8, 1, 0 }
  0x15   : > { %p2730_p11 = pneg %p2958_p7 }
  0x19   : > { %s2728_s25 = scalar_lea.hbm %s3391_s2, 16 }
  0x1a   : > { %p2729_p10 = scmp.ne.s32.totalorder %s3391_s2, %s2728_s25  ;;  %p2735_p0 = scmp.lt.u32.totalorder %s2728_s25, %s3391_s2 }
  0x1c   : > { %p2731_p12 = pnand %p2730_p11, %p2729_p10 }
  0x1e   : > { %p2732_p13 = pneg %p2731_p12 }
  0x20   : > { %p2737_p2 = pnand %p2735_p0, %p2732_p13 }
  0x22   : > { %2740 = shalt.err (!%p2737_p2)
}
  0x23   : > { %s2741_s29 = scalar_lea.vmem %s397_s26, 16  ;;  %s2748_s17 = scalar_lea.vmem %s397_s26, 32 }
  0x24   : > { %p2742_p3 = scmp.ne.s32.totalorder %s397_s26, %s2741_s29  ;;  %p2749_p9 = scmp.lt.s32.totalorder %s397_s26, %s397_s26 }
  0x25   : > { %p2750_p4 = scmp.lt.s32.totalorder %s2748_s17, %s2741_s29 }
  0x26   : > { %p2744_p6 = pnand %p2742_p3, %p2730_p11 }
  0x27   : > { %p2751_p5 = por %p2750_p4, %p2749_p9 }
  0x28   : > { %p2745_p1 = pneg %p2744_p6 }
  0x2a   : > { %p2752_p8 = pnand %p2751_p5, %p2745_p1 }
  0x2c   : > { %2755 = shalt.err (!%p2752_p8)
}
  0x2d   : > { %2649 = dma.hbm_to_vmem [thread:$0]  (!%p2958_p7), %s3391_s2, 16, %s397_s26, [#allocation5]  }
  0x2e   : > { %p3392_p10 = scmp.ne.s32.totalorder %s3390_s30, 0  ;;  %p44_p4 = scmp.eq.s32.totalorder %s2824_s21, 0 }
  0x2f   : > { %p2655_p1 = scmp.lt.s32.totalorder %s2824_s21, 2  ;;  %s443_s27 = sand.u32 1, %s2820_s20  }
  0x30   : > { %s2990_s13 = scalar_select %p3392_p10, %s2820_s20, %s36_s16  }
  0x31   : > { %s2289_s18 = sshll.u32 %s2824_s21, 7  ;;  %p3393_p5 = scmp.ne.s32.totalorder %s2820_s20, %s2816_s19 }
  0x32   : > { %s2288_s28 = sshll.u32 %s443_s27, 3  ;;  %s3002_s17 = scalar_lea.hbm %s3359_s0, %s2289_s18 }
  0x33   : > { %p45_p8 = por %p44_p4, %p3393_p5  ;;  %s447_s30 = scalar_lea.vmem [#allocation2], %s2288_s28 }
  0x34   : > { %s454_s21 = sshll.u32 %s447_s30, 4  ;;  %s444_s16 = scalar_lea.sflag [#allocation3], %s443_s27  ;;  %s3008_s21 = int_to_ptr.vmem [resolvable:$true] %s454_s21 }
  0x35   : > { %p3004_p7 = pnand %p2655_p1, %p45_p8  ;;  %s2756_s14 = scalar_lea.hbm %s3002_s17, 128 }
  0x36   : > { %p2757_p9 = scmp.ne.s32.totalorder %s3002_s17, %s2756_s14  ;;  %s2761_s25 = scalar_lea.hbm %s3359_s0, 256 }
  0x37   : > { %p2758_p11 = pneg %p3004_p7  ;;  %p2762_p0 = scmp.lt.u32.totalorder %s3002_s17, %s3359_s0 }
  0x38   : > { %p2763_p2 = scmp.lt.u32.totalorder %s2761_s25, %s2756_s14  ;;  %p2765_p6 = scmp.lt.u32.totalorder %s2756_s14, %s3002_s17 }
  0x39   : > { %p2759_p12 = pnand %p2758_p11, %p2757_p9 }
  0x3a   : > { %p2764_p3 = por %p2763_p2, %p2762_p0 }
  0x3b   : > { %p2760_p13 = pneg %p2759_p12 }
  0x3c   : > { %p2766_p10 = por %p2765_p6, %p2764_p3 }
  0x3e   : > { %p2767_p4 = pnand %p2766_p10, %p2760_p13 }
  0x40   : > { %2770 = shalt.err (!%p2767_p4)
}
  0x41   : > { %s2771_s27 = scalar_lea.vmem %s3008_s21, 128  ;;  %s2827_s28 = smov [#allocation2]  }
  0x42   : > { %p2772_p1 = scmp.ne.s32.totalorder %s3008_s21, %s2771_s27  ;;  %s2776_s30 = sshll.u32 %s2827_s28, 4  ;;  %s2777_s30 = int_to_ptr.vmem [resolvable:$false] %s2776_s30 }
  0x43   : > { %s2778_s2 = scalar_lea.vmem %s2777_s30, 256  ;;  %p2779_p9 = scmp.lt.s32.totalorder %s3008_s21, %s2777_s30 }
  0x44   : > { %p2774_p5 = pnand %p2772_p1, %p2758_p11  ;;  %p2780_p12 = scmp.lt.s32.totalorder %s2778_s2, %s2771_s27 }
  0x46   : > { %p2775_p8 = pneg %p2774_p5  ;;  %p2781_p0 = por %p2780_p12, %p2779_p9 }
  0x48   : > { %p2782_p2 = pnand %p2781_p0, %p2775_p8 }
  0x4a   : > { %2785 = shalt.err (!%p2782_p2)
}
  0x4b   : > { %2653 = dma.hbm_to_vmem [thread:$0]  (!%p3004_p7), %s3002_s17, 128, %s3008_s21, %s444_s16  }
  0x4c   : > { %p3395_p13 = scmp.ne.s32.totalorder %s3387_s24, 0 }
  0x4d   : > { %s465_s14 = sand.u32 (!%p3395_p13), 1, %s2816_s19   ;;  %p3396_p11 = scmp.ne.s32.totalorder (!%p3395_p13), %s3386_s23, 0 }
  0x4e   : > { %463 = sbr.rel (%p3395_p13) target bundleno = 5157 (0x1425), region = 80  ;;  %s2291_s15 = sshll.u32 (!%p3395_p13), %s465_s14, 3 }
  0x4f   : > { %s466_s18 = scalar_lea.sflag (!%p3395_p13), [#allocation3], %s465_s14  ;;  %s469_s25 = scalar_lea.vmem (!%p3395_p13), [#allocation2], %s2291_s15 }
  0x55   : > { %2803 = dma.done.wait (%p3396_p11), %s466_s18, 128  }
  0x56   : > { %2805 = vsyncadd (%p3396_p11), %s466_s18, 4294967168  ;;  %p3397_p3 = scmp.eq.s32.totalorder %s2935_s22, 0 }
  0x58   : > { %2807 = dma.done.wait (%p3397_p3), [#allocation5], 16   ;;  %p3398_p6 = pmov %p3397_p3 }
  0x59   : > { %vm526_vm0 = vcmask 261120   ;;  %v523_v0 = vld [vmem:[%s469_s25] sm:$0xff]  ;;  %v557_v9 = vld [vmem:[%s3362_s3 + $0x10] sm:$0xff]  ;;  %v2828_v10 = vmov 0.0|0.0   ;;  %v558_v12 = vld [vmem:[%s3362_s3 + $0x18] sm:$0xff]  ;;  %vm2829_vm1 = vmmov 0  }
  0x5a   : > { %2809 = vsyncadd (%p3398_p6), [#allocation5], 4294967280  ;;  %v527_v1 = vsel %vm526_vm0, %v523_v0, 0.0  ;;  %v555_v7 = vld [vmem:[%s3362_s3] sm:$0xff]  ;;  %v556_v8 = vld [vmem:[%s3362_s3 + $0x8] sm:$0xff]  ;;  %2580 = vmatprep.subr.bf16.mxu0 %v2828_v10  ;;  %v2830_v13 = vmov 0.0   ;;  %v2584_v14 = vpack.c.bf16 %v558_v12, %v557_v9 }
  0x5b   : > { %528 = vadd.xlane.f32.xlu0 %v527_v1  ;;  %v2581_v11 = vpack.c.bf16 %v556_v8, %v555_v7  ;;  %2438 = vmatprep.mubr.msk.f32.mxu0 %vm2829_vm1, %v2830_v13  ;;  %v2294_v19 = vld [vmem:[%s3360_s1] ss:$0 sm:$0xff]  ;;  %v2295_v21 = vld [vmem:[#allocation4] ss:$0 sm:$0xff]  ;;  %s2831_s15 = smov 112   ;;  %s2832_s18 = smov 96  }
  0x5c   : > { %2446 = vmatprep.subr.mxu1 %v2830_v13  ;;  %2448 = vmatprep.mubr.msk.f32.mxu1 %vm2829_vm1, %v2830_v13  ;;  %v2296_v24 = vld [vmem:[%s3363_s4] ss:$0 sm:$0xff]  ;;  %s2833_s25 = smov 80   ;;  %vm646_vm2 = vcmask 130048   ;;  %vm722_vm3 = vcmask 64512   ;;  %s2834_s23 = smov 48  }
  0x5d   : > { %2582 = vmatpush3.bf16.msra.mxu0 %v2581_v11  ;;  %s2835_s24 = smov 64   ;;  %v639_v54 = vld [vmem:[%s3364_s5] sm:$0xff]  ;;  %v640_v55 = vld [vmem:[%s3364_s5 + $0x8] sm:$0xff]  ;;  %v641_v60 = vld [vmem:[%s3364_s5 + $0x10] sm:$0xff]  ;;  %vm1268_vm4 = vcmask 523264   ;;  %s3399_s21 = sld [smem:[#allocation10_spill]] }
  0x5e   : > { %2583 = vmatprep.subr.bf16.mxu0 %v2828_v10  ;;  %v2590_v58 = vpack.c.bf16 %v640_v55, %v639_v54  ;;  %v642_v61 = vld [vmem:[%s3364_s5 + $0x18] sm:$0xff]  ;;  %v2306_v8 = vld [vmem:[%s3365_s6] ss:$0 sm:$0xff]  ;;  %s3401_s28 = sld [smem:[#allocation11_spill]]  ;;  %p519_p7 = scmp.lt.s32.totalorder %s2935_s22, 1  ;;  %vm2203_vm5 = vcmask 1040384  }
  0x5f   : > { %v2587_v62 = vpack.c.bf16 %v642_v61, %v641_v60  ;;  %v2311_v60 = vld [vmem:[%s3371_s12] ss:$0 sm:$0xff]  ;;  %vm2205_vm6 = vcmask 1041408   ;;  %s3402_s27 = sld [smem:[#allocation12_spill]]  ;;  %vm2207_vm7 = vcmask 256000  }
  0x60   : > { %s3408_s22 = smov (!%p519_p7, %s2935_s22), 1 }
  0x61   : > { %2585 = vmatpush3.bf16.msra.mxu0 %v2584_v14  ;;  %s2293_s26 = sshll.u32 %s3408_s22, 2 }
  0x62   : > { %2441 = vmatprep.subr.mxu0 %v2830_v13 }
  0x63   : > { %s3400_s16 = smov %s3399_s21 }
  0x65   : > { %s522_s30 = scalar_lea.vmem %s3402_s27, %s2293_s26 }
  0xe8   : > { %v529_v2 = vpop.xlane.xlu0 %528 }
  0xe9   : > { %v531_v3 = vmul.f32 0.03125, %v529_v2 }
  0xeb   : > { %v532_v4 = vsub.f32 %v523_v0, %v531_v3 }
  0xed   : > { %v533_v5 = vmul.f32 %v532_v4, %v532_v4 }
  0xef   : > { %v534_v6 = vsel %vm526_vm0, %v533_v5, 0.0 }
  0xf0   : > { %535 = vadd.xlane.f32.xlu0 %v534_v6 }
 0x17d   : > { %v536_v15 = vpop.xlane.xlu0 %535 }
 0x17e   : > { %v537_v16 = vmul.f32 0.03125, %v536_v15 }
 0x180   : > { %v538_v17 = vadd.f32 1e-12, %v537_v16 }
 0x182   : > { %2698 = vrsqrt.f32 %v538_v17 }
 0x18c   : > { %v2699_v18 = vpop.eup %2698 }
 0x18d   : > { %v540_v20 = vmul.f32 %v2699_v18, %v532_v4 }
 0x18f   : > { %v547_v22 = vmul.f32 %v2294_v19, %v540_v20  ;;  %v1160_v19 = vld [vmem:[%s3368_s9] sm:$0xff]  ;;  %v1161_v20 = vld [vmem:[%s3368_s9 + $0x8] sm:$0xff] }
 0x191   : > { %v3071_v23 = vadd.f32 %v2295_v21, %v547_v22  ;;  %v2593_v21 = vpack.c.bf16 %v1161_v20, %v1160_v19  ;;  %v1162_v22 = vld [vmem:[%s3368_s9 + $0x10] sm:$0xff]  ;;  %v2313_v19 = vld [vmem:[%s3399_s21] ss:$0 sm:$0xff] }
 0x193   : > { %2439 = vmatmul.mubr.msk.f32.vlgmr.msra.gmra.mrb[0].mxu0 %vm526_vm0, %v3071_v23 }
 0x194   : > { %2443 = vmatprep.mubr.msk.f32.mxu0 %vm2829_vm1, %v2830_v13 }
 0x266   : > { %v635_v25 = vpop.f32.mrb[0].mxu0 }
 0x267   : > { %v636_v26 = vadd.f32 %v2296_v24, %v635_v25  ;;  %v2440_v27 = vpop.f32.mrb[1].mxu0  ;;  %v1163_v24 = vld [vmem:[%s3368_s9 + $0x18] sm:$0xff] }
 0x268   : > { %v2596_v25 = vpack.c.bf16 %v1163_v24, %v1162_v22 }
 0x269   : > { %810 = vrot.lane.b32.xlu0 %v636_v26, %s2831_s15  ;;  %644 = vrot.lane.b32.xlu1 %v636_v26, %s2832_s18 }
 0x26d   : > { %812 = vrot.lane.b32.xlu1 %v636_v26, %s2833_s25 }
 0x2db   : > { %v645_v28 = vpop.permute.xlu1 %644  ;;  %v811_v30 = vpop.permute.xlu0 %810 }
 0x2dc   : > { %2442 = vmatpush3.xpose.msk.msra.mxu0 %vm646_vm2, %v645_v28 }
 0x2dd   : > { %2451 = vmatprep.subr.mxu0 %v2830_v13 }
 0x2df   : > { %2444 = vmatmul.mubr.msk.f32.vlgmr.msra.gmra.mrb[2].mxu0 %vm646_vm2, %v636_v26  ;;  %v813_v29 = vpop.permute.xlu1 %812 }
 0x2e0   : > { %2452 = vmatpush3.xpose.msk.msra.mxu0 %vm646_vm2, %v813_v29  ;;  %2453 = vmatprep.mubr.msk.f32.mxu0 %vm2829_vm1, %v2830_v13 }
 0x2e1   : > { %2586 = vmatprep.subr.bf16.mxu0 %v2828_v10 }
 0x2e3   : > { %2454 = vmatmul.mubr.msk.f32.vlgmr.msra.gmra.mrb[4].mxu0 %vm646_vm2, %v811_v30  ;;  %v2307_v30 = vld [vmem:[%s3366_s7] ss:$0 sm:$0xff] }
 0x2e4   : > { %2465 = vmatprep.mubr.msk.f32.mxu0 %vm2829_vm1, %v2830_v13  ;;  %2588 = vmatpush3.bf16.msra.mxu0 %v2587_v62 }
 0x2e5   : > { %2592 = vmatprep.subr.bf16.mxu0 %v2828_v10 }
 0x3b2   : > { %v717_v31 = vpop.f32.mrb[2].mxu0 }
 0x3b3   : > { %v721_v32 = vmul.f32 0.25, %v717_v31  ;;  %v2445_v33 = vpop.f32.mrb[3].mxu0 }
 0x3b5   : > { %v723_v34 = vsel %vm722_vm3, %v721_v32, -inf }
 0x3b6   : > { %724 = vmax.xlane.f32.xlu1 %v723_v34  ;;  %v884_v35 = vpop.f32.mrb[4].mxu0 }
 0x3b7   : > { %v888_v36 = vmul.f32 0.25, %v884_v35  ;;  %v2455_v37 = vpop.f32.mrb[5].mxu0  ;;  %v1253_v35 = vld [vmem:[%s3370_s11] sm:$0xff] }
 0x3b9   : > { %v889_v38 = vsel %vm722_vm3, %v888_v36, -inf }
 0x3ba   : > { %890 = vmax.xlane.f32.xlu0 %v889_v38  ;;  %v1255_v38 = vld [vmem:[%s3370_s11 + $0x10] sm:$0xff] }
 0x3d0   : > { %900 = vrot.lane.b32.xlu0 %v636_v26, %s2834_s23 }
 0x443   : > { %v725_v39 = vpop.xlane.xlu1 %724 }
 0x444   : > { %v726_v40 = vsub.f32 %v721_v32, %v725_v39  ;;  %v2308_v32 = vld [vmem:[%s3367_s8] ss:$0 sm:$0xff]  ;;  %v1256_v39 = vld [vmem:[%s3370_s11 + $0x18] sm:$0xff] }
 0x446   : > { %v727_v41 = vmul.f32 1.442695, %v726_v40  ;;  %v2602_v40 = vpack.c.bf16 %v1256_v39, %v1255_v38 }
 0x447   : > { %v891_v42 = vpop.xlane.xlu0 %890 }
 0x448   : > { %2700 = vpow2.f32 %v727_v41  ;;  %v892_v43 = vsub.f32 %v888_v36, %v891_v42  ;;  %v1254_v36 = vld [vmem:[%s3370_s11 + $0x8] sm:$0xff]  ;;  %v1257_v41 = vld [vmem:[%s3370_s11 + $0x20] sm:$0xff] }
 0x449   : > { %v2599_v37 = vpack.c.bf16 %v1254_v36, %v1253_v35  ;;  %v1258_v42 = vld [vmem:[%s3370_s11 + $0x28] sm:$0xff] }
 0x44a   : > { %v893_v44 = vmul.f32 1.442695, %v892_v43  ;;  %v2605_v43 = vpack.c.bf16 %v1258_v42, %v1257_v41 }
 0x44b   : > { %v901_v56 = vpop.permute.xlu0 %900 }
 0x44c   : > { %2702 = vpow2.f32 %v893_v44  ;;  %v1259_v44 = vld [vmem:[%s3370_s11 + $0x30] sm:$0xff] }
 0x452   : > { %v2701_v45 = vpop.eup %2700 }
 0x453   : > { %v729_v46 = vsel %vm722_vm3, %v2701_v45, 0.0 }
 0x454   : > { %730 = vadd.xlane.f32.xlu1 %v729_v46 }
 0x456   : > { %v2703_v47 = vpop.eup %2702 }
 0x457   : > { %v895_v48 = vsel %vm722_vm3, %v2703_v47, 0.0 }
 0x458   : > { %896 = vadd.xlane.f32.xlu1 %v895_v48 }
 0x469   : > { %734 = vrot.lane.b32.xlu1 %v636_v26, %s2835_s24 }
 0x4e1   : > { %v731_v49 = vpop.xlane.xlu1 %730 }
 0x4e2   : > { %2704 = vrcp.f32 %v731_v49 }
 0x4e5   : > { %v897_v50 = vpop.xlane.xlu1 %896 }
 0x4e6   : > { %2706 = vrcp.f32 %v897_v50 }
 0x4e9   : > { %v735_v51 = vpop.permute.xlu1 %734 }
 0x4ea   : > { %2447 = vmatpush3.msra.mxu1 %v735_v51 }
 0x4eb   : > { %2456 = vmatprep.subr.mxu1 %v2830_v13 }
 0x4ec   : > { %v2705_v52 = vpop.eup %2704 }
 0x4ed   : > { %v733_v53 = vmul.f32 %v2705_v52, %v2701_v45  ;;  %v1260_v45 = vld [vmem:[%s3370_s11 + $0x38] sm:$0xff] }
 0x4ee   : > { %v2608_v46 = vpack.c.bf16 %v1260_v45, %v1259_v44 }
 0x4ef   : > { %2449 = vmatmul.mubr.msk.f32.vlgmr.msra.gmra.mrb[0].mxu1 %vm722_vm3, %v733_v53 }
 0x4f0   : > { %v2707_v57 = vpop.eup %2706  ;;  %2457 = vmatpush3.msra.mxu1 %v901_v56  ;;  %2458 = vmatprep.mubr.msk.f32.mxu1 %vm2829_vm1, %v2830_v13 }
 0x4f1   : > { %v899_v59 = vmul.f32 %v2707_v57, %v2703_v47  ;;  %2589 = vmatprep.subr.bf16.mxu1 %v2828_v10  ;;  %v2309_v47 = vld [vmem:[%s3369_s10] ss:$0 sm:$0xff] }
 0x4f3   : > { %2459 = vmatmul.mubr.msk.f32.vlgmr.msra.gmra.mrb[2].mxu1 %vm722_vm3, %v899_v59 }
 0x4f4   : > { %2591 = vmatpush3.bf16.msra.mxu1 %v2590_v58  ;;  %2472 = vmatprep.mubr.msk.f32.mxu1 %vm2829_vm1, %v2830_v13 }
 0x4f5   : > { %2598 = vmatprep.subr.bf16.mxu1 %v2828_v10 }
 0x5c2   : > { %v806_v63 = vpop.f32.mrb[0].mxu1 }
 0x5c3   : > { %v2450_v0 = vpop.f32.mrb[1].mxu1  ;;  %2473 = vmatmul.mubr.msk.f32.vlgmr.msra.gmra.mrb[4].mxu1 %vm646_vm2, %v806_v63 }
 0x5c4   : > { %2502 = vmatprep.mubr.msk.f32.mxu1 %vm2829_vm1, %v2830_v13  ;;  %2600 = vmatpush3.bf16.msra.mxu1 %v2599_v37 }
 0x5c5   : > { %2601 = vmatprep.subr.bf16.mxu1 %v2828_v10 }
 0x5c6   : > { %v972_v1 = vpop.f32.mrb[2].mxu1 }
 0x5c7   : > { %v2460_v2 = vpop.f32.mrb[3].mxu1  ;;  %2466 = vmatmul.mubr.msk.f32.vlgmr.msra.gmra.mrb[6].mxu0 %vm646_vm2, %v972_v1 }
 0x5c8   : > { %2483 = vmatprep.mubr.msk.f32.mxu0 %vm2829_vm1, %v2830_v13  ;;  %2594 = vmatpush3.bf16.msra.mxu0 %v2593_v21  ;;  %v2314_v21 = vld [vmem:[%s3401_s28] ss:$0 sm:$0xff] }
 0x5c9   : > { %2595 = vmatprep.subr.bf16.mxu0 %v2828_v10  ;;  %2603 = vmatpush3.bf16.msra.mxu1 %v2602_v40 }
 0x5ca   : > { %2604 = vmatprep.subr.bf16.mxu1 %v2828_v10 }
 0x5cc   : > { %2597 = vmatpush3.bf16.msra.mxu0 %v2596_v25  ;;  %v2320_v25 = vld [vmem:[%s3363_s4 + $0x1] ss:$0 sm:$0xff] }
 0x5cd   : > { %2610 = vmatprep.subr.bf16.mxu0 %v2828_v10  ;;  %2606 = vmatpush3.bf16.msra.mxu1 %v2605_v43 }
 0x5ce   : > { %2607 = vmatprep.subr.bf16.mxu1 %v2828_v10 }
 0x5d1   : > { %2609 = vmatpush3.bf16.msra.mxu1 %v2608_v46 }
 0x5d2   : > { %2521 = vmatprep.subr.mxu1 %v2830_v13 }
 0x696   : > { %v1118_v3 = vpop.f32.mrb[4].mxu1 }
 0x697   : > { %v2474_v4 = vpop.f32.mrb[5].mxu1 }
 0x69a   : > { %v1045_v5 = vpop.f32.mrb[6].mxu0 }
 0x69b   : > { %v1119_v6 = vadd.f32 %v1118_v3, %v1045_v5  ;;  %v2467_v7 = vpop.f32.mrb[7].mxu0 }
 0x69c   : > { %v2315_v7 = vld [vmem:[%s3362_s3 + $0x20] sm:$0xff] }
 0x69d   : > { %v1122_v9 = vadd.f32 %v1119_v6, %v3071_v23 }
 0x69f   : > { %v1130_v11 = vadd.f32 %v2306_v8, %v1122_v9  ;;  %v2316_v8 = vld [vmem:[%s3362_s3 + $0x28] sm:$0xff] }
 0x6a0   : > { %v2611_v9 = vpack.c.bf16 %v2316_v8, %v2315_v7 }
 0x6a1   : > { %v1133_v12 = vsel %vm526_vm0, %v1130_v11, 0.0 }
 0x6a2   : > { %1134 = vadd.xlane.f32.xlu1 %v1133_v12  ;;  %v2318_v12 = vld [vmem:[%s3362_s3 + $0x38] sm:$0xff] }
 0x72f   : > { %v1135_v14 = vpop.xlane.xlu1 %1134 }
 0x730   : > { %v1136_v15 = vmul.f32 0.03125, %v1135_v14 }
 0x732   : > { %v1137_v16 = vsub.f32 %v1130_v11, %v1136_v15  ;;  %v2317_v11 = vld [vmem:[%s3362_s3 + $0x30] sm:$0xff] }
 0x733   : > { %v2614_v14 = vpack.c.bf16 %v2318_v12, %v2317_v11 }
 0x734   : > { %v1138_v17 = vmul.f32 %v1137_v16, %v1137_v16 }
 0x736   : > { %v1139_v18 = vsel %vm526_vm0, %v1138_v17, 0.0 }
 0x737   : > { %1140 = vadd.xlane.f32.xlu0 %v1139_v18 }
 0x7c4   : > { %v1141_v26 = vpop.xlane.xlu0 %1140 }
 0x7c5   : > { %v1142_v27 = vmul.f32 0.03125, %v1141_v26 }
 0x7c7   : > { %v1143_v28 = vadd.f32 1e-12, %v1142_v27 }
 0x7c9   : > { %2708 = vrsqrt.f32 %v1143_v28 }
 0x7d3   : > { %v2709_v29 = vpop.eup %2708 }
 0x7d4   : > { %v1145_v31 = vmul.f32 %v2709_v29, %v1137_v16 }
 0x7d6   : > { %v1152_v33 = vmul.f32 %v2307_v30, %v1145_v31 }
 0x7d8   : > { %v1159_v34 = vadd.f32 %v2308_v32, %v1152_v33 }
 0x7da   : > { %2484 = vmatmul.mubr.msk.f32.vlgmr.msra.gmra.mrb[8].mxu0 %vm526_vm0, %v1159_v34 }
 0x7db   : > { %2513 = vmatprep.mubr.msk.f32.mxu0 %vm2829_vm1, %v2830_v13  ;;  %2612 = vmatpush3.bf16.msra.mxu0 %v2611_v9  ;;  %v2335_v9 = vld [vmem:[%s3365_s6 + $0x1] ss:$0 sm:$0xff] }
 0x7dc   : > { %2613 = vmatprep.subr.bf16.mxu0 %v2828_v10 }
 0x7df   : > { %2615 = vmatpush3.bf16.msra.mxu0 %v2614_v14 }
 0x7e0   : > { %2516 = vmatprep.subr.mxu0 %v2830_v13 }
 0x8ad   : > { %v1240_v48 = vpop.f32.mrb[8].mxu0 }
 0x8ae   : > { %v1241_v49 = vadd.f32 %v2309_v47, %v1240_v48  ;;  %v2485_v50 = vpop.f32.mrb[9].mxu0 }
 0x8b0   : > { %v1245_v51 = vmul.f32 0.044715, %v1241_v49  ;;  %v1244_v57 = vmul.f32 0.5, %v1241_v49 }
 0x8b2   : > { %v1246_v52 = vmul.f32 %v1245_v51, %v1241_v49 }
 0x8b4   : > { %v1247_v53 = vmul.f32 %v1246_v52, %v1241_v49 }
 0x8b6   : > { %v1248_v54 = vadd.f32 %v1247_v53, %v1241_v49 }
 0x8b8   : > { %v1249_v55 = vmul.f32 0.7978846, %v1248_v54 }
 0x8ba   : > { %2710 = vtanh.f32 %v1249_v55  ;;  %v2322_v55 = vld [vmem:[%s3364_s5 + $0x20] sm:$0xff] }
 0x8c4   : > { %v2711_v56 = vpop.eup %2710 }
 0x8c5   : > { %v1251_v58 = vadd.f32 1.0, %v2711_v56  ;;  %v2323_v56 = vld [vmem:[%s3364_s5 + $0x28] sm:$0xff] }
 0x8c7   : > { %v1252_v59 = vmul.f32 %v1251_v58, %v1244_v57 }
 0x8c9   : > { %2503 = vmatmul.mubr.msk.f32.vlgmr.msra.gmra.mrb[6].mxu1 %vm1268_vm4, %v1252_v59  ;;  %v2620_v59 = vpack.c.bf16 %v2323_v56, %v2322_v55 }
 0x8ca   : > { %2523 = vmatprep.mubr.msk.f32.mxu1 %vm2829_vm1, %v2830_v13 }
 0x99c   : > { %v1338_v61 = vpop.f32.mrb[6].mxu1 }
 0x99d   : > { %v1339_v62 = vadd.f32 %v2311_v60, %v1338_v61  ;;  %v2504_v63 = vpop.f32.mrb[7].mxu1  ;;  %v2324_v61 = vld [vmem:[%s3364_s5 + $0x30] sm:$0xff] }
 0x99f   : > { %v1342_v0 = vadd.f32 %v1339_v62, %v1159_v34  ;;  %v2325_v62 = vld [vmem:[%s3364_s5 + $0x38] sm:$0xff] }
 0x9a0   : > { %v2617_v63 = vpack.c.bf16 %v2325_v62, %v2324_v61 }
 0x9a1   : > { %v1345_v1 = vsel %vm526_vm0, %v1342_v0, 0.0 }
 0x9a2   : > { %1346 = vadd.xlane.f32.xlu1 %v1345_v1 }
 0xa2f   : > { %v1347_v2 = vpop.xlane.xlu1 %1346 }
 0xa30   : > { %v1348_v3 = vmul.f32 0.03125, %v1347_v2 }
 0xa32   : > { %v1349_v4 = vsub.f32 %v1342_v0, %v1348_v3 }
 0xa34   : > { %v1350_v5 = vmul.f32 %v1349_v4, %v1349_v4 }
 0xa36   : > { %v1351_v6 = vsel %vm526_vm0, %v1350_v5, 0.0 }
 0xa37   : > { %1352 = vadd.xlane.f32.xlu1 %v1351_v6 }
 0xac4   : > { %v1353_v15 = vpop.xlane.xlu1 %1352 }
 0xac5   : > { %v1354_v16 = vmul.f32 0.03125, %v1353_v15 }
 0xac7   : > { %v1355_v17 = vadd.f32 1e-12, %v1354_v16 }
 0xac9   : > { %2712 = vrsqrt.f32 %v1355_v17 }
 0xad3   : > { %v2713_v18 = vpop.eup %2712 }
 0xad4   : > { %v1357_v20 = vmul.f32 %v2713_v18, %v1349_v4 }
 0xad6   : > { %v1364_v22 = vmul.f32 %v2313_v19, %v1357_v20  ;;  %v2340_v19 = vld [vmem:[%s3368_s9 + $0x20] sm:$0xff]  ;;  %v2341_v20 = vld [vmem:[%s3368_s9 + $0x28] sm:$0xff] }
 0xad8   : > { %v3215_v24 = vadd.f32 %v2314_v21, %v1364_v22  ;;  %v2623_v21 = vpack.c.bf16 %v2341_v20, %v2340_v19  ;;  %v2342_v22 = vld [vmem:[%s3368_s9 + $0x30] sm:$0xff] }
 0xada   : > { %2514 = vmatmul.mubr.msk.f32.vlgmr.msra.gmra.mrb[10].mxu0 %vm526_vm0, %v3215_v24 }
 0xadb   : > { %2518 = vmatprep.mubr.msk.f32.mxu0 %vm2829_vm1, %v2830_v13 }
 0xbad   : > { %v1454_v26 = vpop.f32.mrb[10].mxu0 }
 0xbae   : > { %v1455_v27 = vadd.f32 %v2320_v25, %v1454_v26  ;;  %v2515_v28 = vpop.f32.mrb[11].mxu0  ;;  %v2343_v25 = vld [vmem:[%s3368_s9 + $0x38] sm:$0xff] }
 0xbaf   : > { %v2626_v26 = vpack.c.bf16 %v2343_v25, %v2342_v22 }
 0xbb0   : > { %1630 = vrot.lane.b32.xlu0 %v1455_v27, %s2833_s25  ;;  %1464 = vrot.lane.b32.xlu1 %v1455_v27, %s2832_s18 }
 0xbb4   : > { %1628 = vrot.lane.b32.xlu1 %v1455_v27, %s2831_s15 }
 0xc22   : > { %v1465_v29 = vpop.permute.xlu1 %1464  ;;  %v1631_v30 = vpop.permute.xlu0 %1630 }
 0xc23   : > { %2517 = vmatpush3.xpose.msk.msra.mxu0 %vm646_vm2, %v1465_v29 }
 0xc24   : > { %2526 = vmatprep.subr.mxu0 %v2830_v13 }
 0xc26   : > { %2519 = vmatmul.mubr.msk.f32.vlgmr.msra.gmra.mrb[12].mxu0 %vm646_vm2, %v1455_v27  ;;  %v1629_v31 = vpop.permute.xlu1 %1628 }
 0xc27   : > { %2527 = vmatpush3.xpose.msk.msra.mxu0 %vm646_vm2, %v1631_v30  ;;  %2528 = vmatprep.mubr.msk.f32.mxu0 %vm2829_vm1, %v2830_v13 }
 0xc28   : > { %2616 = vmatprep.subr.bf16.mxu0 %v2828_v10 }
 0xc2a   : > { %2529 = vmatmul.mubr.msk.f32.vlgmr.msra.gmra.mrb[14].mxu0 %vm646_vm2, %v1629_v31  ;;  %v2338_v31 = vld [vmem:[%s3366_s7 + $0x1] ss:$0 sm:$0xff] }
 0xc2b   : > { %2540 = vmatprep.mubr.msk.f32.mxu0 %vm2829_vm1, %v2830_v13  ;;  %2618 = vmatpush3.bf16.msra.mxu0 %v2617_v63 }
 0xc2c   : > { %2622 = vmatprep.subr.bf16.mxu0 %v2828_v10 }
 0xcf9   : > { %v1536_v32 = vpop.f32.mrb[12].mxu0 }
 0xcfa   : > { %v1540_v33 = vmul.f32 0.25, %v1536_v32  ;;  %v2520_v34 = vpop.f32.mrb[13].mxu0 }
 0xcfc   : > { %v1541_v35 = vsel %vm722_vm3, %v1540_v33, -inf }
 0xcfd   : > { %1542 = vmax.xlane.f32.xlu1 %v1541_v35  ;;  %v1702_v36 = vpop.f32.mrb[14].mxu0 }
 0xcfe   : > { %v1706_v37 = vmul.f32 0.25, %v1702_v36  ;;  %v2530_v38 = vpop.f32.mrb[15].mxu0  ;;  %v2347_v36 = vld [vmem:[%s3370_s11 + $0x40] sm:$0xff] }
 0xd00   : > { %v1707_v39 = vsel %vm722_vm3, %v1706_v37, -inf }
 0xd01   : > { %1708 = vmax.xlane.f32.xlu0 %v1707_v39  ;;  %v2349_v39 = vld [vmem:[%s3370_s11 + $0x50] sm:$0xff] }
 0xd8a   : > { %v1543_v40 = vpop.xlane.xlu1 %1542 }
 0xd8b   : > { %v1544_v41 = vsub.f32 %v1540_v33, %v1543_v40  ;;  %v2339_v33 = vld [vmem:[%s3367_s8 + $0x1] ss:$0 sm:$0xff]  ;;  %v2350_v40 = vld [vmem:[%s3370_s11 + $0x58] sm:$0xff] }
 0xd8d   : > { %v1545_v42 = vmul.f32 1.442695, %v1544_v41  ;;  %v2632_v41 = vpack.c.bf16 %v2350_v40, %v2349_v39 }
 0xd8e   : > { %v1709_v43 = vpop.xlane.xlu0 %1708 }
 0xd8f   : > { %2714 = vpow2.f32 %v1545_v42  ;;  %v1710_v44 = vsub.f32 %v1706_v37, %v1709_v43  ;;  %v2348_v37 = vld [vmem:[%s3370_s11 + $0x48] sm:$0xff]  ;;  %v2351_v42 = vld [vmem:[%s3370_s11 + $0x60] sm:$0xff] }
 0xd90   : > { %v2629_v38 = vpack.c.bf16 %v2348_v37, %v2347_v36  ;;  %v2352_v43 = vld [vmem:[%s3370_s11 + $0x68] sm:$0xff] }
 0xd91   : > { %v1711_v45 = vmul.f32 1.442695, %v1710_v44  ;;  %v2635_v44 = vpack.c.bf16 %v2352_v43, %v2351_v42 }
 0xd93   : > { %2716 = vpow2.f32 %v1711_v45  ;;  %v2353_v45 = vld [vmem:[%s3370_s11 + $0x70] sm:$0xff] }
 0xd99   : > { %v2715_v46 = vpop.eup %2714 }
 0xd9a   : > { %v1547_v47 = vsel %vm722_vm3, %v2715_v46, 0.0 }
 0xd9b   : > { %1548 = vadd.xlane.f32.xlu0 %v1547_v47 }
 0xd9d   : > { %v2717_v48 = vpop.eup %2716 }
 0xd9e   : > { %v1713_v49 = vsel %vm722_vm3, %v2717_v48, 0.0 }
 0xd9f   : > { %1714 = vadd.xlane.f32.xlu1 %v1713_v49 }
 0xdb0   : > { %1718 = vrot.lane.b32.xlu1 %v1455_v27, %s2834_s23 }
 0xdb1   : > { %1552 = vrot.lane.b32.xlu0 %v1455_v27, %s2835_s24 }
 0xe28   : > { %v1549_v50 = vpop.xlane.xlu0 %1548 }
 0xe29   : > { %2718 = vrcp.f32 %v1549_v50 }
 0xe2c   : > { %v1715_v51 = vpop.xlane.xlu1 %1714  ;;  %v1553_v52 = vpop.permute.xlu0 %1552 }
 0xe2d   : > { %2720 = vrcp.f32 %v1715_v51  ;;  %2522 = vmatpush3.msra.mxu1 %v1553_v52 }
 0xe2e   : > { %2531 = vmatprep.subr.mxu1 %v2830_v13 }
 0xe30   : > { %v1719_v57 = vpop.permute.xlu1 %1718 }
 0xe33   : > { %v2719_v53 = vpop.eup %2718 }
 0xe34   : > { %v1551_v54 = vmul.f32 %v2719_v53, %v2715_v46  ;;  %v2354_v46 = vld [vmem:[%s3370_s11 + $0x78] sm:$0xff] }
 0xe35   : > { %v2638_v47 = vpack.c.bf16 %v2354_v46, %v2353_v45 }
 0xe36   : > { %2524 = vmatmul.mubr.msk.f32.vlgmr.msra.gmra.mrb[8].mxu1 %vm722_vm3, %v1551_v54 }
 0xe37   : > { %v2721_v58 = vpop.eup %2720  ;;  %2532 = vmatpush3.msra.mxu1 %v1719_v57  ;;  %2533 = vmatprep.mubr.msk.f32.mxu1 %vm2829_vm1, %v2830_v13 }
 0xe38   : > { %v1717_v60 = vmul.f32 %v2721_v58, %v2717_v48  ;;  %2619 = vmatprep.subr.bf16.mxu1 %v2828_v10  ;;  %v2345_v48 = vld [vmem:[%s3369_s10 + $0x1] ss:$0 sm:$0xff] }
 0xe3a   : > { %2534 = vmatmul.mubr.msk.f32.vlgmr.msra.gmra.mrb[10].mxu1 %vm722_vm3, %v1717_v60 }
 0xe3b   : > { %2621 = vmatpush3.bf16.msra.mxu1 %v2620_v59  ;;  %2547 = vmatprep.mubr.msk.f32.mxu1 %vm2829_vm1, %v2830_v13 }
 0xe3c   : > { %2628 = vmatprep.subr.bf16.mxu1 %v2828_v10 }
 0xf09   : > { %v1624_v0 = vpop.f32.mrb[8].mxu1 }
 0xf0a   : > { %v2525_v1 = vpop.f32.mrb[9].mxu1  ;;  %2548 = vmatmul.mubr.msk.f32.vlgmr.msra.gmra.mrb[12].mxu1 %vm646_vm2, %v1624_v0 }
 0xf0b   : > { %2577 = vmatprep.mubr.msk.f32.mxu1 %vm2829_vm1, %v2830_v13  ;;  %2630 = vmatpush3.bf16.msra.mxu1 %v2629_v38 }
 0xf0c   : > { %2631 = vmatprep.subr.bf16.mxu1 %v2828_v10 }
 0xf0d   : > { %v1790_v2 = vpop.f32.mrb[10].mxu1 }
 0xf0e   : > { %v2535_v3 = vpop.f32.mrb[11].mxu1  ;;  %2541 = vmatmul.mubr.msk.f32.vlgmr.msra.gmra.mrb[16].mxu0 %vm646_vm2, %v1790_v2 }
 0xf0f   : > { %2558 = vmatprep.mubr.msk.f32.mxu0 %vm2829_vm1, %v2830_v13  ;;  %2624 = vmatpush3.bf16.msra.mxu0 %v2623_v21 }
 0xf10   : > { %2625 = vmatprep.subr.bf16.mxu0 %v2828_v10  ;;  %2633 = vmatpush3.bf16.msra.mxu1 %v2632_v41 }
 0xf11   : > { %2634 = vmatprep.subr.bf16.mxu1 %v2828_v10 }
 0xf13   : > { %2627 = vmatpush3.bf16.msra.mxu0 %v2626_v26 }
 0xf14   : > { %2636 = vmatpush3.bf16.msra.mxu1 %v2635_v44 }
 0xf15   : > { %2637 = vmatprep.subr.bf16.mxu1 %v2828_v10  ;;  %v2356_v10 = vld [vmem:[%s3371_s12 + $0x1] ss:$0 sm:$0xff] }
 0xf18   : > { %2639 = vmatpush3.bf16.msra.mxu1 %v2638_v47 }
 0xfdd   : > { %v1936_v4 = vpop.f32.mrb[12].mxu1 }
 0xfde   : > { %v2549_v5 = vpop.f32.mrb[13].mxu1 }
 0xfe1   : > { %v1863_v6 = vpop.f32.mrb[16].mxu0 }
 0xfe2   : > { %v1937_v7 = vadd.f32 %v1936_v4, %v1863_v6  ;;  %v2542_v8 = vpop.f32.mrb[17].mxu0 }
 0xfe4   : > { %v1940_v11 = vadd.f32 %v1937_v7, %v3215_v24 }
 0xfe6   : > { %v1949_v12 = vadd.f32 %v2335_v9, %v1940_v11 }
 0xfe8   : > { %v1954_v14 = vsel %vm526_vm0, %v1949_v12, 0.0 }
 0xfe9   : > { %1955 = vadd.xlane.f32.xlu1 %v1954_v14 }
0x1076   : > { %v1956_v15 = vpop.xlane.xlu1 %1955 }
0x1077   : > { %v1957_v16 = vmul.f32 0.03125, %v1956_v15  ;;  %v2361_v15 = vld [vmem:[%s3401_s28 + $0x1] ss:$0 sm:$0xff] }
0x1079   : > { %v1958_v17 = vsub.f32 %v1949_v12, %v1957_v16  ;;  %v2360_v12 = vld [vmem:[%s3400_s16 + $0x1] ss:$0 sm:$0xff] }
0x107b   : > { %v1959_v18 = vmul.f32 %v1958_v17, %v1958_v17 }
0x107d   : > { %v1960_v13 = vsel %vm526_vm0, %v1959_v18, 0.0 }
0x107e   : > { %1961 = vadd.xlane.f32.xlu0 %v1960_v13 }
0x110b   : > { %v1962_v27 = vpop.xlane.xlu0 %1961 }
0x110c   : > { %v1963_v28 = vmul.f32 0.03125, %v1962_v27 }
0x110e   : > { %v1964_v29 = vadd.f32 1e-12, %v1963_v28 }
0x1110   : > { %2722 = vrsqrt.f32 %v1964_v29 }
0x111a   : > { %v2723_v30 = vpop.eup %2722 }
0x111b   : > { %v1966_v32 = vmul.f32 %v2723_v30, %v1958_v17  ;;  %v2198_v17 = vrot.slane %v3215_v24, 7 }
0x111d   : > { %v1973_v34 = vmul.f32 %v2338_v31, %v1966_v32  ;;  %v2204_v19 = vsel %vm2203_vm5, %v3071_v23, %v2198_v17 }
0x111f   : > { %v1980_v35 = vadd.f32 %v2339_v33, %v1973_v34 }
0x1121   : > { %2559 = vmatmul.mubr.msk.f32.vlgmr.msra.gmra.mrb[18].mxu0 %vm526_vm0, %v1980_v35 }
0x11f4   : > { %v2063_v49 = vpop.f32.mrb[18].mxu0 }
0x11f5   : > { %v2064_v50 = vadd.f32 %v2345_v48, %v2063_v49  ;;  %v2560_v51 = vpop.f32.mrb[19].mxu0 }
0x11f7   : > { %v2068_v52 = vmul.f32 0.044715, %v2064_v50  ;;  %v2067_v58 = vmul.f32 0.5, %v2064_v50 }
0x11f9   : > { %v2069_v53 = vmul.f32 %v2068_v52, %v2064_v50 }
0x11fb   : > { %v2070_v54 = vmul.f32 %v2069_v53, %v2064_v50 }
0x11fd   : > { %v2071_v55 = vadd.f32 %v2070_v54, %v2064_v50 }
0x11ff   : > { %v2072_v56 = vmul.f32 0.7978846, %v2071_v55 }
0x1201   : > { %2724 = vtanh.f32 %v2072_v56 }
0x120b   : > { %v2725_v57 = vpop.eup %2724 }
0x120c   : > { %v2074_v59 = vadd.f32 1.0, %v2725_v57 }
0x120e   : > { %v2075_v60 = vmul.f32 %v2074_v59, %v2067_v58 }
0x1210   : > { %2578 = vmatmul.mubr.msk.f32.vlgmr.msra.gmra.mrb[14].mxu1 %vm1268_vm4, %v2075_v60 }
0x12e3   : > { %v2162_v61 = vpop.f32.mrb[14].mxu1 }
0x12e4   : > { %v2163_v62 = vadd.f32 %v2356_v10, %v2162_v61  ;;  %v2579_v63 = vpop.f32.mrb[15].mxu1 }
0x12e6   : > { %v2166_v0 = vadd.f32 %v2163_v62, %v1980_v35 }
0x12e8   : > { %v2171_v1 = vsel %vm526_vm0, %v2166_v0, 0.0 }
0x12e9   : > { %2172 = vadd.xlane.f32.xlu0 %v2171_v1 }
0x1376   : > { %v2173_v2 = vpop.xlane.xlu0 %2172 }
0x1377   : > { %v2174_v3 = vmul.f32 0.03125, %v2173_v2 }
0x1379   : > { %v2175_v4 = vsub.f32 %v2166_v0, %v2174_v3 }
0x137b   : > { %v2176_v5 = vmul.f32 %v2175_v4, %v2175_v4 }
0x137d   : > { %v2177_v6 = vsel %vm526_vm0, %v2176_v5, 0.0 }
0x137e   : > { %2178 = vadd.xlane.f32.xlu1 %v2177_v6 }
0x140b   : > { %v2179_v7 = vpop.xlane.xlu1 %2178 }
0x140c   : > { %v2180_v8 = vmul.f32 0.03125, %v2179_v7 }
0x140e   : > { %v2181_v9 = vadd.f32 1e-12, %v2180_v8 }
0x1410   : > { %2726 = vrsqrt.f32 %v2181_v9 }
0x141a   : > { %v2727_v11 = vpop.eup %2726 }
0x141b   : > { %v2183_v14 = vmul.f32 %v2727_v11, %v2175_v4 }
0x141d   : > { %v2190_v16 = vmul.f32 %v2360_v12, %v2183_v14 }
0x141f   : > { %v2197_v18 = vadd.f32 %v2361_v15, %v2190_v16 }
0x1421   : > { %v2201_v13 = vrot.slane %v2197_v18, 6 }
0x1423   : > { %v2206_v20 = vsel %vm2205_vm6, %v2204_v19, %v2201_v13 }
0x1424   : > { %2208 = vst.msk [vmem:[%s522_s30] sm:$0x7] %vm2207_vm7, %v2206_v20 }
0x1425 PF: > { %s3403_s21 = sld [smem:[#allocation8_spill]]  ;;  %s3404_s18 = smov %s2816_s19 }
0x1426   : > { %s3405_s19 = smov %s2820_s20  ;;  %s3406_s20 = smov %s2990_s13 }
0x142b   : > { %p26_p10 = scmp.ge.s32.totalorder %s3403_s21, 4  }
0x142d   :  { %28 = sbr.rel (!%p26_p10) target bundleno = 9 (0x9), region = 136 }
0x1434   :  { %2228 = vsyncpa [#allocation3], 1 }
0x1435   :  { %2230 = vsyncpa [#allocation3 + $0x1], 1 }
0x1436   :  { %2231 = vsyncpa [#allocation5], 1 }

</bundles_post_ra>
